<compile_context>
chip_gen: v5e
topology: v5e:2x2
jax: 0.10.0
libtpu: 0.0.40
codegen_flags: <defaults>
</compile_context>

<pallas_src>
import functools
import math

import jax
import jax.numpy as jnp
from jax import lax
from jax.experimental import pallas as pl
from jax.experimental.pallas import tpu as pltpu


# ----------------------------- tiling helpers --------------------------------

def _pick_tile(dim, preferred):
    """Largest preferred tile that divides `dim`, else the full dim."""
    for t in preferred:
        if dim % t == 0:
            return t
    return dim


# ----------------------------- Pallas kernels --------------------------------

def _matmul_kernel(x_ref, w_ref, b_ref, o_ref, acc_ref, *, activation):
    """Tiled matmul with K-reduction accumulator and fused bias/ReLU epilogue."""
    k_idx = pl.program_id(2)

    @pl.when(k_idx == 0)
    def _():
        acc_ref[...] = jnp.zeros(acc_ref.shape, jnp.float32)

    acc_ref[...] += jnp.dot(x_ref[...], w_ref[...],
                            preferred_element_type=jnp.float32)

    @pl.when(k_idx == pl.num_programs(2) - 1)
    def _():
        out = acc_ref[...] + b_ref[...]
        if activation == "relu":
            out = jnp.maximum(out, 0.0)
        o_ref[...] = out.astype(o_ref.dtype)


def linear_pallas(x, w, b, activation=None):
    """x: [M, K] @ w: [K, N] + b: [N]  ->  [M, N]   (optional fused ReLU)."""
    M, K = x.shape
    _, N = w.shape
    TM = _pick_tile(M, (512, 256, 128))
    TN = _pick_tile(N, (512, 256, 128))
    TK = _pick_tile(K, (1024, 512, 256, 128))
    grid = (M // TM, N // TN, K // TK)
    return pl.pallas_call(
        functools.partial(_matmul_kernel, activation=activation),
        out_shape=jax.ShapeDtypeStruct((M, N), x.dtype),
        grid=grid,
        in_specs=[
            pl.BlockSpec((TM, TK), lambda i, j, k: (i, k)),
            pl.BlockSpec((TK, TN), lambda i, j, k: (k, j)),
            pl.BlockSpec((1, TN), lambda i, j, k: (0, j)),
        ],
        out_specs=pl.BlockSpec((TM, TN), lambda i, j, k: (i, j)),
        scratch_shapes=[pltpu.VMEM((TM, TN), jnp.float32)],
        compiler_params=pltpu.CompilerParams(
            dimension_semantics=("parallel", "parallel", "arbitrary")),
    )(x, w, b.reshape(1, N))


def _linear_res_ln_kernel(x_ref, w_ref, b_ref, r_ref, g_ref, be_ref, o_ref, *, eps):
    """o = LayerNorm(x @ w + b + res) — fused projection + residual + LN."""
    acc = jnp.dot(x_ref[...], w_ref[...], preferred_element_type=jnp.float32)
    acc = acc + b_ref[...] + r_ref[...].astype(jnp.float32)
    mean = jnp.mean(acc, axis=-1, keepdims=True)
    var = jnp.mean((acc - mean) ** 2, axis=-1, keepdims=True)
    y = (acc - mean) * lax.rsqrt(var + eps)
    o_ref[...] = (y * g_ref[...] + be_ref[...]).astype(o_ref.dtype)


def linear_res_ln_pallas(x, w, b, res, gamma, beta, eps=1e-12):
    """[M, K] @ [K, N] + b, add residual [M, N], LayerNorm over N."""
    M, K = x.shape
    _, N = w.shape
    TM = _pick_tile(M, (512, 256, 128))
    grid = (M // TM,)
    return pl.pallas_call(
        functools.partial(_linear_res_ln_kernel, eps=eps),
        out_shape=jax.ShapeDtypeStruct((M, N), x.dtype),
        grid=grid,
        in_specs=[
            pl.BlockSpec((TM, K), lambda i: (i, 0)),
            pl.BlockSpec((K, N), lambda i: (0, 0)),
            pl.BlockSpec((1, N), lambda i: (0, 0)),
            pl.BlockSpec((TM, N), lambda i: (i, 0)),
            pl.BlockSpec((1, N), lambda i: (0, 0)),
            pl.BlockSpec((1, N), lambda i: (0, 0)),
        ],
        out_specs=pl.BlockSpec((TM, N), lambda i: (i, 0)),
        compiler_params=pltpu.CompilerParams(dimension_semantics=("parallel",)),
    )(x, w, b.reshape(1, N), res, gamma.reshape(1, N), beta.reshape(1, N))


def _flash_mha_kernel(q_ref, k_ref, v_ref, mask_ref, o_ref,
                      m_sc, l_sc, acc_sc, *, scale):
    """Flash-style masked attention over one (batch, q-tile, kv-tile) block.

    q_ref: [H, TQ, Dh], k_ref/v_ref: [H, TK, Dh], mask_ref: [TQ, TK] (1=keep).
    Online softmax state (m, l, acc) lives in VMEM scratch across the kv axis.
    """
    ki = pl.program_id(2)

    @pl.when(ki == 0)
    def _():
        m_sc[...] = jnp.full(m_sc.shape, -jnp.inf, jnp.float32)
        l_sc[...] = jnp.zeros(l_sc.shape, jnp.float32)
        acc_sc[...] = jnp.zeros(acc_sc.shape, jnp.float32)

    q = q_ref[...].astype(jnp.float32)
    k = k_ref[...].astype(jnp.float32)
    v = v_ref[...].astype(jnp.float32)
    mask = mask_ref[...]

    s = jnp.einsum("hqd,hkd->hqk", q, k,
                   preferred_element_type=jnp.float32) * scale
    s = jnp.where(mask[None, :, :] > 0.5, s, jnp.float32(-1e9))

    m_prev = m_sc[...]
    m_new = jnp.maximum(m_prev, jnp.max(s, axis=-1, keepdims=True))
    alpha = jnp.exp(m_prev - m_new)
    p = jnp.exp(s - m_new)

    l_sc[...] = alpha * l_sc[...] + jnp.sum(p, axis=-1, keepdims=True)
    acc_sc[...] = alpha * acc_sc[...] + jnp.einsum(
        "hqk,hkd->hqd", p, v, preferred_element_type=jnp.float32)
    m_sc[...] = m_new

    @pl.when(ki == pl.num_programs(2) - 1)
    def _():
        inv_l = pl.reciprocal(l_sc[...], approx=True)
        o_ref[...] = (acc_sc[...] * inv_l).astype(o_ref.dtype)


def mha_pallas(q, k, v, mask):
    """Fused masked scaled-dot-product attention (flash-style tiling).

    q: [B, H, Lq, Dh], k/v: [B, H, Lk, Dh], mask: [B, Lq, Lk] f32 (1=keep).
    Returns [B, H, Lq, Dh].
    """
    B, H, Lq, Dh = q.shape
    Lk = k.shape[2]
    scale = 1.0 / math.sqrt(Dh)
    TQ = _pick_tile(Lq, (256, 128))
    TK = _pick_tile(Lk, (512, 256, 128))
    grid = (B, Lq // TQ, Lk // TK)
    return pl.pallas_call(
        functools.partial(_flash_mha_kernel, scale=scale),
        out_shape=jax.ShapeDtypeStruct((B, H, Lq, Dh), q.dtype),
        grid=grid,
        in_specs=[
            pl.BlockSpec((None, H, TQ, Dh), lambda b, qi, ki: (b, 0, qi, 0)),
            pl.BlockSpec((None, H, TK, Dh), lambda b, qi, ki: (b, 0, ki, 0)),
            pl.BlockSpec((None, H, TK, Dh), lambda b, qi, ki: (b, 0, ki, 0)),
            pl.BlockSpec((None, TQ, TK), lambda b, qi, ki: (b, qi, ki)),
        ],
        out_specs=pl.BlockSpec((None, H, TQ, Dh), lambda b, qi, ki: (b, 0, qi, 0)),
        scratch_shapes=[
            pltpu.VMEM((H, TQ, 1), jnp.float32),   # running max m
            pltpu.VMEM((H, TQ, 1), jnp.float32),   # running denom l
            pltpu.VMEM((H, TQ, Dh), jnp.float32),  # running output acc
        ],
        compiler_params=pltpu.CompilerParams(
            dimension_semantics=("parallel", "parallel", "arbitrary")),
    )(q, k, v, mask)


# ------------------------------- JAX glue -------------------------------------

def sinusoid_pos_encoding(max_len, dim):
    pos = jnp.arange(max_len, dtype=jnp.float32)[:, None]
    i = jnp.arange(0, dim, 2, dtype=jnp.float32)
    angle = pos / jnp.power(10000.0, i / dim)
    pe = jnp.zeros((max_len, dim), jnp.float32)
    pe = pe.at[:, 0::2].set(jnp.sin(angle))
    pe = pe.at[:, 1::2].set(jnp.cos(angle))
    return pe


def init_params(key, enc_voc, dec_voc, dim, ffn_hidden, n_layers, max_len):
    keys = iter(jax.random.split(key, 1024))

    def lin(i, o):
        return {"w": jax.random.normal(next(keys), (i, o), jnp.float32) * 0.02,
                "b": jnp.zeros((o,), jnp.float32)}

    def ln():
        return {"g": jnp.ones((dim,), jnp.float32),
                "b": jnp.zeros((dim,), jnp.float32)}

    def self_attn():
        # Packed Q/K/V projection: columns [0:D]=Q, [D:2D]=K, [2D:3D]=V.
        return {"wqkv": lin(dim, 3 * dim), "wo": lin(dim, dim)}

    def cross_attn():
        # Q from decoder stream; K/V packed from encoder stream.
        return {"wq": lin(dim, dim), "wkv": lin(dim, 2 * dim), "wo": lin(dim, dim)}

    def enc_layer():
        return {"attn": self_attn(), "ln1": ln(),
                "ff1": lin(dim, ffn_hidden), "ff2": lin(ffn_hidden, dim),
                "ln2": ln()}

    def dec_layer():
        return {"self_attn": self_attn(), "ln1": ln(),
                "cross_attn": cross_attn(), "ln2": ln(),
                "ff1": lin(dim, ffn_hidden), "ff2": lin(ffn_hidden, dim),
                "ln3": ln()}

    return {
        "enc_emb": jax.random.normal(next(keys), (enc_voc, dim), jnp.float32) * 0.02,
        "dec_emb": jax.random.normal(next(keys), (dec_voc, dim), jnp.float32) * 0.02,
        "pe": sinusoid_pos_encoding(max_len, dim),
        "enc_layers": [enc_layer() for _ in range(n_layers)],
        "dec_layers": [dec_layer() for _ in range(n_layers)],
        "out_proj": lin(dim, dec_voc),
    }


def _split_heads(x, n_head):
    # [B, L, D] -> [B, H, L, Dh]
    B, L, D = x.shape
    return x.reshape(B, L, n_head, D // n_head).transpose(0, 2, 1, 3)


def _merge_heads(x):
    # [B, H, L, Dh] -> [B*L, D]
    B, H, L, Dh = x.shape
    return x.transpose(0, 2, 1, 3).reshape(B * L, H * Dh)


def self_attention_heads(p, x, mask, n_head):
    """Fused QKV projection + flash attention; returns concatenated heads [B*L, D]
    (the output projection Wo is fused with residual+LN by the caller)."""
    B, L, D = x.shape
    dh = D // n_head
    qkv = linear_pallas(x.reshape(B * L, D), p["wqkv"]["w"], p["wqkv"]["b"])
    qkv = qkv.reshape(B, L, 3, n_head, dh)
    q = qkv[:, :, 0].transpose(0, 2, 1, 3)
    k = qkv[:, :, 1].transpose(0, 2, 1, 3)
    v = qkv[:, :, 2].transpose(0, 2, 1, 3)
    oh = mha_pallas(q, k, v, mask)
    return _merge_heads(oh)


def cross_attention_heads(p, q_in, kv_in, mask, n_head):
    """Q from q_in, fused K/V projection from kv_in; returns heads [B*Lq, D]."""
    B, Lq, D = q_in.shape
    Lk = kv_in.shape[1]
    dh = D // n_head
    q = linear_pallas(q_in.reshape(B * Lq, D), p["wq"]["w"], p["wq"]["b"])
    kv = linear_pallas(kv_in.reshape(B * Lk, D), p["wkv"]["w"], p["wkv"]["b"])
    q = _split_heads(q.reshape(B, Lq, D), n_head)
    kv = kv.reshape(B, Lk, 2, n_head, dh)
    k = kv[:, :, 0].transpose(0, 2, 1, 3)
    v = kv[:, :, 1].transpose(0, 2, 1, 3)
    oh = mha_pallas(q, k, v, mask)
    return _merge_heads(oh)


def encoder_layer(p, x, src_mask, n_head):
    B, L, D = x.shape
    res = x.reshape(B * L, D)
    heads = self_attention_heads(p["attn"], x, src_mask, n_head)
    # Wo projection + residual + LayerNorm fused in one kernel.
    x2 = linear_res_ln_pallas(heads, p["attn"]["wo"]["w"], p["attn"]["wo"]["b"],
                              res, p["ln1"]["g"], p["ln1"]["b"])
    res = x2
    h = linear_pallas(x2, p["ff1"]["w"], p["ff1"]["b"], activation="relu")
    x2 = linear_res_ln_pallas(h, p["ff2"]["w"], p["ff2"]["b"],
                              res, p["ln2"]["g"], p["ln2"]["b"])
    return x2.reshape(B, L, D)


def decoder_layer(p, x, enc, trg_mask, src_trg_mask, n_head):
    B, L, D = x.shape
    res = x.reshape(B * L, D)
    heads = self_attention_heads(p["self_attn"], x, trg_mask, n_head)
    x2 = linear_res_ln_pallas(heads, p["self_attn"]["wo"]["w"],
                              p["self_attn"]["wo"]["b"],
                              res, p["ln1"]["g"], p["ln1"]["b"])
    res = x2
    heads = cross_attention_heads(p["cross_attn"], x2.reshape(B, L, D), enc,
                                  src_trg_mask, n_head)
    x2 = linear_res_ln_pallas(heads, p["cross_attn"]["wo"]["w"],
                              p["cross_attn"]["wo"]["b"],
                              res, p["ln2"]["g"], p["ln2"]["b"])
    res = x2
    h = linear_pallas(x2, p["ff1"]["w"], p["ff1"]["b"], activation="relu")
    x2 = linear_res_ln_pallas(h, p["ff2"]["w"], p["ff2"]["b"],
                              res, p["ln3"]["g"], p["ln3"]["b"])
    return x2.reshape(B, L, D)


def embed(table, pe, tokens):
    # TODO(synk): embedding gather stays in plain JAX (no clean Pallas gather).
    L = tokens.shape[1]
    return jnp.take(table, tokens, axis=0) + pe[:L][None, :, :]


def make_pad_mask(q, k, pad_idx):
    """[B, Lq, Lk] boolean mask (True = keep), matching the PyTorch module."""
    k_mask = (k != pad_idx)[:, None, :]   # [B, 1, Lk]
    q_mask = (q != pad_idx)[:, :, None]   # [B, Lq, 1]
    return k_mask & q_mask


def make_no_peak_mask(len_q, len_k):
    return jnp.tril(jnp.ones((len_q, len_k), dtype=bool))


def transformer_forward(params, src, trg, *, src_pad_idx, n_head):
    Lt = trg.shape[1]
    src_mask = make_pad_mask(src, src, src_pad_idx).astype(jnp.float32)
    src_trg_mask = make_pad_mask(trg, src, src_pad_idx).astype(jnp.float32)
    trg_mask = (make_pad_mask(trg, trg, src_pad_idx)
                & make_no_peak_mask(Lt, Lt)[None, :, :]).astype(jnp.float32)

    # Encoder
    x = embed(params["enc_emb"], params["pe"], src)
    for lyr in params["enc_layers"]:
        x = encoder_layer(lyr, x, src_mask, n_head)
    enc_src = x

    # Decoder
    y = embed(params["dec_emb"], params["pe"], trg)
    for lyr in params["dec_layers"]:
        y = decoder_layer(lyr, y, enc_src, trg_mask, src_trg_mask, n_head)

    B, L, D = y.shape
    logits = linear_pallas(y.reshape(B * L, D),
                           params["out_proj"]["w"], params["out_proj"]["b"])
    return logits.reshape(B, L, -1)


# --------------------------------- main ----------------------------------------

if __name__ == "__main__":
    # Small config consistent with the module's constructor.
    B = 2
    SRC_LEN = 8
    TRG_LEN = 8
    DIM = 32
    N_HEAD = 4
    MAX_LEN = 16
    FFN_HIDDEN = 64
    N_LAYERS = 2
    ENC_VOC = 32
    DEC_VOC = 32
    SRC_PAD_IDX = 0
    TRG_PAD_IDX = 0      # noqa: F841 (kept for parity with the PyTorch module)
    TRG_SOS_IDX = 1      # noqa: F841

    key = jax.random.PRNGKey(0)
    k_par, k_src, k_trg = jax.random.split(key, 3)

    params = init_params(k_par, ENC_VOC, DEC_VOC, DIM, FFN_HIDDEN, N_LAYERS, MAX_LEN)

    src = jax.random.randint(k_src, (B, SRC_LEN), 1, ENC_VOC, dtype=jnp.int32)
    trg = jax.random.randint(k_trg, (B, TRG_LEN), 1, DEC_VOC, dtype=jnp.int32)
    # Insert some pad tokens so the pad masks actually do something.
    src = src.at[1, -2:].set(SRC_PAD_IDX)
    trg = trg.at[1, -3:].set(SRC_PAD_IDX)

    fwd = jax.jit(functools.partial(transformer_forward,
                                    src_pad_idx=SRC_PAD_IDX, n_head=N_HEAD))
    out = fwd(params, src, trg)
    out = jax.block_until_ready(out)

    assert out.shape == (B, TRG_LEN, DEC_VOC), out.shape
    assert bool(jnp.all(jnp.isfinite(out)))
    print("KERNEL_OK")
</pallas_src>

<mosaic_0001>
module attributes {stable_mosaic.version = 11 : i64} {
  func.func @_matmul_kernel(%arg0: i32, %arg1: i32, %arg2: i32, %arg3: memref<16x32xf32, #tpu.memory_space<vmem>>, %arg4: memref<32x96xf32, #tpu.memory_space<vmem>>, %arg5: memref<1x96xf32, #tpu.memory_space<vmem>>, %arg6: memref<16x96xf32, #tpu.memory_space<vmem>>, %arg7: memref<16x96xf32, #tpu.memory_space<vmem>>) attributes {dimension_semantics = [#tpu.dimension_semantics<parallel>, #tpu.dimension_semantics<parallel>, #tpu.dimension_semantics<arbitrary>], iteration_bounds = array<i64: 1, 1, 1>, scalar_prefetch = 0 : i64, scratch_operands = 1 : i64, tpu.core_type = #tpu.core_type<tc>, window_params = [{transform_indices = @transform_0, window_bounds = array<i64: 16, 32>}, {transform_indices = @transform_1, window_bounds = array<i64: 32, 96>}, {transform_indices = @transform_2, window_bounds = array<i64: 1, 96>}, {transform_indices = @transform_3, window_bounds = array<i64: 16, 96>}]} {
    %c0_i32 = arith.constant 0 : i32
    %0 = arith.cmpi eq, %arg2, %c0_i32 : i32
    %1 = arith.extui %0 : i1 to i32
    %c0_i32_0 = arith.constant 0 : i32
    %2 = arith.cmpi ne, %1, %c0_i32_0 : i32
    scf.if %2 {
      %cst_10 = arith.constant 0.000000e+00 : f32
      %12 = vector.broadcast %cst_10 : f32 to vector<16x96xf32>
      %c0_11 = arith.constant 0 : index
      %c0_12 = arith.constant 0 : index
      %13 = vector.load %arg7[%c0_11, %c0_12] : memref<16x96xf32, #tpu.memory_space<vmem>>, vector<16x96xf32>
      tpu.vector_store %arg7[%c0_11, %c0_12], %12 {strides = array<i32>} : memref<16x96xf32, #tpu.memory_space<vmem>>, vector<16x96xf32>,
    } else {
    }
    %c0 = arith.constant 0 : index
    %c0_1 = arith.constant 0 : index
    %3 = vector.load %arg7[%c0, %c0_1] : memref<16x96xf32, #tpu.memory_space<vmem>>, vector<16x96xf32>
    %c0_2 = arith.constant 0 : index
    %c0_3 = arith.constant 0 : index
    %4 = vector.load %arg3[%c0_2, %c0_3] : memref<16x32xf32, #tpu.memory_space<vmem>>, vector<16x32xf32>
    %c0_4 = arith.constant 0 : index
    %c0_5 = arith.constant 0 : index
    %5 = vector.load %arg4[%c0_4, %c0_5] : memref<32x96xf32, #tpu.memory_space<vmem>>, vector<32x96xf32>
    %cst = arith.constant dense<0.000000e+00> : vector<16x96xf32>
    %6 = tpu.matmul %4, %5, %cst {dimension_numbers = #tpu.dot_dimension_numbers<[1], [0], [0], [1], [0, 0, 1, 1], [], []>} : vector<16x32xf32>, vector<32x96xf32>, vector<16x96xf32> -> vector<16x96xf32>
    %7 = arith.addf %3, %6 : vector<16x96xf32>
    %c0_6 = arith.constant 0 : index
    %c0_7 = arith.constant 0 : index
    %8 = vector.load %arg7[%c0_6, %c0_7] : memref<16x96xf32, #tpu.memory_space<vmem>>, vector<16x96xf32>
    tpu.vector_store %arg7[%c0_6, %c0_7], %7 {strides = array<i32>} : memref<16x96xf32, #tpu.memory_space<vmem>>, vector<16x96xf32>,
    %c0_i32_8 = arith.constant 0 : i32
    %9 = arith.cmpi eq, %arg2, %c0_i32_8 : i32
    %10 = arith.extui %9 : i1 to i32
    %c0_i32_9 = arith.constant 0 : i32
    %11 = arith.cmpi ne, %10, %c0_i32_9 : i32
    scf.if %11 {
      %c0_10 = arith.constant 0 : index
      %c0_11 = arith.constant 0 : index
      %12 = vector.load %arg7[%c0_10, %c0_11] : memref<16x96xf32, #tpu.memory_space<vmem>>, vector<16x96xf32>
      %c0_12 = arith.constant 0 : index
      %c0_13 = arith.constant 0 : index
      %13 = vector.load %arg5[%c0_12, %c0_13] : memref<1x96xf32, #tpu.memory_space<vmem>>, vector<1x96xf32>
      %14 = vector.broadcast %13 : vector<1x96xf32> to vector<16x96xf32>
      %15 = arith.addf %12, %14 : vector<16x96xf32>
      %c0_14 = arith.constant 0 : index
      %c0_15 = arith.constant 0 : index
      %16 = vector.load %arg6[%c0_14, %c0_15] : memref<16x96xf32, #tpu.memory_space<vmem>>, vector<16x96xf32>
      tpu.vector_store %arg6[%c0_14, %c0_15], %15 {strides = array<i32>} : memref<16x96xf32, #tpu.memory_space<vmem>>, vector<16x96xf32>,
    } else {
    }
    return
  }
  func.func @transform_0(%arg0: i32, %arg1: i32, %arg2: i32) -> (i32, i32) {
    %c0_i32 = arith.constant 0 : i32
    return %arg0, %arg2 : i32, i32
  }
  func.func @transform_1(%arg0: i32, %arg1: i32, %arg2: i32) -> (i32, i32) {
    %c0_i32 = arith.constant 0 : i32
    return %arg2, %arg1 : i32, i32
  }
  func.func @transform_2(%arg0: i32, %arg1: i32, %arg2: i32) -> (i32, i32) {
    %c0_i32 = arith.constant 0 : i32
    %c0_i32_0 = arith.constant 0 : i32
    return %c0_i32, %arg1 : i32, i32
  }
  func.func @transform_3(%arg0: i32, %arg1: i32, %arg2: i32) -> (i32, i32) {
    %c0_i32 = arith.constant 0 : i32
    return %arg0, %arg1 : i32, i32
  }
}

module attributes {stable_mosaic.version = 11 : i64} {
  func.func @_matmul_kernel(%arg0: i32, %arg1: i32, %arg2: i32, %arg3: memref<16x32xf32, #tpu.memory_space<vmem>>, %arg4: memref<32x32xf32, #tpu.memory_space<vmem>>, %arg5: memref<1x32xf32, #tpu.memory_space<vmem>>, %arg6: memref<16x32xf32, #tpu.memory_space<vmem>>, %arg7: memref<16x32xf32, #tpu.memory_space<vmem>>) attributes {dimension_semantics = [#tpu.dimension_semantics<parallel>, #tpu.dimension_semantics<parallel>, #tpu.dimension_semantics<arbitrary>], iteration_bounds = array<i64: 1, 1, 1>, scalar_prefetch = 0 : i64, scratch_operands = 1 : i64, tpu.core_type = #tpu.core_type<tc>, window_params = [{transform_indices = @transform_0, window_bounds = array<i64: 16, 32>}, {transform_indices = @transform_1, window_bounds = array<i64: 32, 32>}, {transform_indices = @transform_2, window_bounds = array<i64: 1, 32>}, {transform_indices = @transform_3, window_bounds = array<i64: 16, 32>}]} {
    %c0_i32 = arith.constant 0 : i32
    %0 = arith.cmpi eq, %arg2, %c0_i32 : i32
    %1 = arith.extui %0 : i1 to i32
    %c0_i32_0 = arith.constant 0 : i32
    %2 = arith.cmpi ne, %1, %c0_i32_0 : i32
    scf.if %2 {
      %cst_10 = arith.constant 0.000000e+00 : f32
      %12 = vector.broadcast %cst_10 : f32 to vector<16x32xf32>
      %c0_11 = arith.constant 0 : index
      %c0_12 = arith.constant 0 : index
      %13 = vector.load %arg7[%c0_11, %c0_12] : memref<16x32xf32, #tpu.memory_space<vmem>>, vector<16x32xf32>
      tpu.vector_store %arg7[%c0_11, %c0_12], %12 {strides = array<i32>} : memref<16x32xf32, #tpu.memory_space<vmem>>, vector<16x32xf32>,
    } else {
    }
    %c0 = arith.constant 0 : index
    %c0_1 = arith.constant 0 : index
    %3 = vector.load %arg7[%c0, %c0_1] : memref<16x32xf32, #tpu.memory_space<vmem>>, vector<16x32xf32>
    %c0_2 = arith.constant 0 : index
    %c0_3 = arith.constant 0 : index
    %4 = vector.load %arg3[%c0_2, %c0_3] : memref<16x32xf32, #tpu.memory_space<vmem>>, vector<16x32xf32>
    %c0_4 = arith.constant 0 : index
    %c0_5 = arith.constant 0 : index
    %5 = vector.load %arg4[%c0_4, %c0_5] : memref<32x32xf32, #tpu.memory_space<vmem>>, vector<32x32xf32>
    %cst = arith.constant dense<0.000000e+00> : vector<16x32xf32>
    %6 = tpu.matmul %4, %5, %cst {dimension_numbers = #tpu.dot_dimension_numbers<[1], [0], [0], [1], [0, 0, 1, 1], [], []>} : vector<16x32xf32>, vector<32x32xf32>, vector<16x32xf32> -> vector<16x32xf32>
    %7 = arith.addf %3, %6 : vector<16x32xf32>
    %c0_6 = arith.constant 0 : index
    %c0_7 = arith.constant 0 : index
    %8 = vector.load %arg7[%c0_6, %c0_7] : memref<16x32xf32, #tpu.memory_space<vmem>>, vector<16x32xf32>
    tpu.vector_store %arg7[%c0_6, %c0_7], %7 {strides = array<i32>} : memref<16x32xf32, #tpu.memory_space<vmem>>, vector<16x32xf32>,
    %c0_i32_8 = arith.constant 0 : i32
    %9 = arith.cmpi eq, %arg2, %c0_i32_8 : i32
    %10 = arith.extui %9 : i1 to i32
    %c0_i32_9 = arith.constant 0 : i32
    %11 = arith.cmpi ne, %10, %c0_i32_9 : i32
    scf.if %11 {
      %c0_10 = arith.constant 0 : index
      %c0_11 = arith.constant 0 : index
      %12 = vector.load %arg7[%c0_10, %c0_11] : memref<16x32xf32, #tpu.memory_space<vmem>>, vector<16x32xf32>
      %c0_12 = arith.constant 0 : index
      %c0_13 = arith.constant 0 : index
      %13 = vector.load %arg5[%c0_12, %c0_13] : memref<1x32xf32, #tpu.memory_space<vmem>>, vector<1x32xf32>
      %14 = vector.broadcast %13 : vector<1x32xf32> to vector<16x32xf32>
      %15 = arith.addf %12, %14 : vector<16x32xf32>
      %c0_14 = arith.constant 0 : index
      %c0_15 = arith.constant 0 : index
      %16 = vector.load %arg6[%c0_14, %c0_15] : memref<16x32xf32, #tpu.memory_space<vmem>>, vector<16x32xf32>
      tpu.vector_store %arg6[%c0_14, %c0_15], %15 {strides = array<i32>} : memref<16x32xf32, #tpu.memory_space<vmem>>, vector<16x32xf32>,
    } else {
    }
    return
  }
  func.func @transform_0(%arg0: i32, %arg1: i32, %arg2: i32) -> (i32, i32) {
    %c0_i32 = arith.constant 0 : i32
    return %arg0, %arg2 : i32, i32
  }
  func.func @transform_1(%arg0: i32, %arg1: i32, %arg2: i32) -> (i32, i32) {
    %c0_i32 = arith.constant 0 : i32
    return %arg2, %arg1 : i32, i32
  }
  func.func @transform_2(%arg0: i32, %arg1: i32, %arg2: i32) -> (i32, i32) {
    %c0_i32 = arith.constant 0 : i32
    %c0_i32_0 = arith.constant 0 : i32
    return %c0_i32, %arg1 : i32, i32
  }
  func.func @transform_3(%arg0: i32, %arg1: i32, %arg2: i32) -> (i32, i32) {
    %c0_i32 = arith.constant 0 : i32
    return %arg0, %arg1 : i32, i32
  }
}

module attributes {stable_mosaic.version = 11 : i64} {
  func.func @_flash_mha_kernel(%arg0: i32, %arg1: i32, %arg2: i32, %arg3: memref<1x4x8x8xf32, #tpu.memory_space<vmem>>, %arg4: memref<1x4x8x8xf32, #tpu.memory_space<vmem>>, %arg5: memref<1x4x8x8xf32, #tpu.memory_space<vmem>>, %arg6: memref<1x8x8xf32, #tpu.memory_space<vmem>>, %arg7: memref<1x4x8x8xf32, #tpu.memory_space<vmem>>, %arg8: memref<4x8x1xf32, #tpu.memory_space<vmem>>, %arg9: memref<4x8x1xf32, #tpu.memory_space<vmem>>, %arg10: memref<4x8x8xf32, #tpu.memory_space<vmem>>) attributes {dimension_semantics = [#tpu.dimension_semantics<parallel>, #tpu.dimension_semantics<parallel>, #tpu.dimension_semantics<arbitrary>], iteration_bounds = array<i64: 2, 1, 1>, scalar_prefetch = 0 : i64, scratch_operands = 3 : i64, tpu.core_type = #tpu.core_type<tc>, window_params = [{transform_indices = @transform_0, window_bounds = array<i64: 1, 4, 8, 8>}, {transform_indices = @transform_1, window_bounds = array<i64: 1, 4, 8, 8>}, {transform_indices = @transform_2, window_bounds = array<i64: 1, 4, 8, 8>}, {transform_indices = @transform_3, window_bounds = array<i64: 1, 8, 8>}, {transform_indices = @transform_4, window_bounds = array<i64: 1, 4, 8, 8>}]} {
    %c0_i32 = arith.constant 0 : i32
    %0 = arith.cmpi eq, %arg2, %c0_i32 : i32
    %1 = arith.extui %0 : i1 to i32
    %c0_i32_0 = arith.constant 0 : i32
    %2 = arith.cmpi ne, %1, %c0_i32_0 : i32
    scf.if %2 {
      %cst_41 = arith.constant 0xFF800000 : f32
      %46 = vector.broadcast %cst_41 : f32 to vector<4x8x1xf32>
      %c0_42 = arith.constant 0 : index
      %c0_43 = arith.constant 0 : index
      %c0_44 = arith.constant 0 : index
      %47 = vector.load %arg8[%c0_42, %c0_43, %c0_44] : memref<4x8x1xf32, #tpu.memory_space<vmem>>, vector<4x8x1xf32>
      tpu.vector_store %arg8[%c0_42, %c0_43, %c0_44], %46 {strides = array<i32>} : memref<4x8x1xf32, #tpu.memory_space<vmem>>, vector<4x8x1xf32>,
      %cst_45 = arith.constant 0.000000e+00 : f32
      %48 = vector.broadcast %cst_45 : f32 to vector<4x8x1xf32>
      %c0_46 = arith.constant 0 : index
      %c0_47 = arith.constant 0 : index
      %c0_48 = arith.constant 0 : index
      %49 = vector.load %arg9[%c0_46, %c0_47, %c0_48] : memref<4x8x1xf32, #tpu.memory_space<vmem>>, vector<4x8x1xf32>
      tpu.vector_store %arg9[%c0_46, %c0_47, %c0_48], %48 {strides = array<i32>} : memref<4x8x1xf32, #tpu.memory_space<vmem>>, vector<4x8x1xf32>,
      %cst_49 = arith.constant 0.000000e+00 : f32
      %50 = vector.broadcast %cst_49 : f32 to vector<4x8x8xf32>
      %c0_50 = arith.constant 0 : index
      %c0_51 = arith.constant 0 : index
      %c0_52 = arith.constant 0 : index
      %51 = vector.load %arg10[%c0_50, %c0_51, %c0_52] : memref<4x8x8xf32, #tpu.memory_space<vmem>>, vector<4x8x8xf32>
      tpu.vector_store %arg10[%c0_50, %c0_51, %c0_52], %50 {strides = array<i32>} : memref<4x8x8xf32, #tpu.memory_space<vmem>>, vector<4x8x8xf32>,
    } else {
    }
    %c0 = arith.constant 0 : index
    %c0_1 = arith.constant 0 : index
    %c0_2 = arith.constant 0 : index
    %c0_3 = arith.constant 0 : index
    %3 = vector.load %arg3[%c0, %c0_1, %c0_2, %c0_3] : memref<1x4x8x8xf32, #tpu.memory_space<vmem>>, vector<1x4x8x8xf32>
    %4 = vector.shape_cast %3 : vector<1x4x8x8xf32> to vector<4x8x8xf32>
    %c0_4 = arith.constant 0 : index
    %c0_5 = arith.constant 0 : index
    %c0_6 = arith.constant 0 : index
    %c0_7 = arith.constant 0 : index
    %5 = vector.load %arg4[%c0_4, %c0_5, %c0_6, %c0_7] : memref<1x4x8x8xf32, #tpu.memory_space<vmem>>, vector<1x4x8x8xf32>
    %6 = vector.shape_cast %5 : vector<1x4x8x8xf32> to vector<4x8x8xf32>
    %c0_8 = arith.constant 0 : index
    %c0_9 = arith.constant 0 : index
    %c0_10 = arith.constant 0 : index
    %c0_11 = arith.constant 0 : index
    %7 = vector.load %arg5[%c0_8, %c0_9, %c0_10, %c0_11] : memref<1x4x8x8xf32, #tpu.memory_space<vmem>>, vector<1x4x8x8xf32>
    %8 = vector.shape_cast %7 : vector<1x4x8x8xf32> to vector<4x8x8xf32>
    %c0_12 = arith.constant 0 : index
    %c0_13 = arith.constant 0 : index
    %c0_14 = arith.constant 0 : index
    %9 = vector.load %arg6[%c0_12, %c0_13, %c0_14] : memref<1x8x8xf32, #tpu.memory_space<vmem>>, vector<1x8x8xf32>
    %10 = vector.shape_cast %9 : vector<1x8x8xf32> to vector<8x8xf32>
    "tpu.trace_start"() <{level = 10 : i32, message = "hqd,hkd->hqk"}> : () -> ()
    %cst = arith.constant dense<0.000000e+00> : vector<4x8x8xf32>
    %11 = tpu.matmul %4, %6, %cst {dimension_numbers = #tpu.dot_dimension_numbers<[2], [2], [1], [1], [0, 0, 0, 1, 1, 1], [0], [0]>} : vector<4x8x8xf32>, vector<4x8x8xf32>, vector<4x8x8xf32> -> vector<4x8x8xf32>
    "tpu.trace_stop"() : () -> ()
    %cst_15 = arith.constant 0.353553385 : f32
    %12 = vector.broadcast %cst_15 : f32 to vector<4x8x8xf32>
    %13 = arith.mulf %11, %12 : vector<4x8x8xf32>
    %14 = vector.shape_cast %10 : vector<8x8xf32> to vector<1x8x8xf32>
    %cst_16 = arith.constant 5.000000e-01 : f32
    %15 = vector.broadcast %cst_16 : f32 to vector<1x8x8xf32>
    %16 = arith.cmpf ogt, %14, %15 : vector<1x8x8xf32>
    %cst_17 = arith.constant -1.000000e+09 : f32
    %17 = vector.shape_cast %16 : vector<1x8x8xi1> to vector<1x8x8xi1>
    %18 = vector.broadcast %17 : vector<1x8x8xi1> to vector<4x8x8xi1>
    %19 = vector.broadcast %cst_17 : f32 to vector<4x8x8xf32>
    %20 = arith.select %18, %13, %19 : vector<4x8x8xi1>, vector<4x8x8xf32>
    %c0_18 = arith.constant 0 : index
    %c0_19 = arith.constant 0 : index
    %c0_20 = arith.constant 0 : index
    %21 = vector.load %arg8[%c0_18, %c0_19, %c0_20] : memref<4x8x1xf32, #tpu.memory_space<vmem>>, vector<4x8x1xf32>
    %cst_21 = arith.constant dense<0xFF800000> : vector<4x8xf32>
    %22 = vector.multi_reduction <maximumf>, %20, %cst_21 [2] : vector<4x8x8xf32> to vector<4x8xf32>
    %23 = vector.shape_cast %22 : vector<4x8xf32> to vector<4x8x1xf32>
    %24 = arith.maximumf %21, %23 : vector<4x8x1xf32>
    %25 = arith.subf %21, %24 : vector<4x8x1xf32>
    %26 = math.exp %25 : vector<4x8x1xf32>
    %27 = vector.broadcast %24 : vector<4x8x1xf32> to vector<4x8x8xf32>
    %28 = arith.subf %20, %27 : vector<4x8x8xf32>
    %29 = math.exp %28 : vector<4x8x8xf32>
    %c0_22 = arith.constant 0 : index
    %c0_23 = arith.constant 0 : index
    %c0_24 = arith.constant 0 : index
    %30 = vector.load %arg9[%c0_22, %c0_23, %c0_24] : memref<4x8x1xf32, #tpu.memory_space<vmem>>, vector<4x8x1xf32>
    %31 = arith.mulf %26, %30 : vector<4x8x1xf32>
    %cst_25 = arith.constant dense<0.000000e+00> : vector<4x8xf32>
    %32 = vector.multi_reduction <add>, %29, %cst_25 [2] : vector<4x8x8xf32> to vector<4x8xf32>
    %33 = vector.shape_cast %32 : vector<4x8xf32> to vector<4x8x1xf32>
    %34 = arith.addf %31, %33 : vector<4x8x1xf32>
    %c0_26 = arith.constant 0 : index
    %c0_27 = arith.constant 0 : index
    %c0_28 = arith.constant 0 : index
    %35 = vector.load %arg9[%c0_26, %c0_27, %c0_28] : memref<4x8x1xf32, #tpu.memory_space<vmem>>, vector<4x8x1xf32>
    tpu.vector_store %arg9[%c0_26, %c0_27, %c0_28], %34 {strides = array<i32>} : memref<4x8x1xf32, #tpu.memory_space<vmem>>, vector<4x8x1xf32>,
    %c0_29 = arith.constant 0 : index
    %c0_30 = arith.constant 0 : index
    %c0_31 = arith.constant 0 : index
    %36 = vector.load %arg10[%c0_29, %c0_30, %c0_31] : memref<4x8x8xf32, #tpu.memory_space<vmem>>, vector<4x8x8xf32>
    %37 = vector.broadcast %26 : vector<4x8x1xf32> to vector<4x8x8xf32>
    %38 = arith.mulf %37, %36 : vector<4x8x8xf32>
    "tpu.trace_start"() <{level = 10 : i32, message = "hqk,hkd->hqd"}> : () -> ()
    %cst_32 = arith.constant dense<0.000000e+00> : vector<4x8x8xf32>
    %39 = tpu.matmul %29, %8, %cst_32 {dimension_numbers = #tpu.dot_dimension_numbers<[2], [1], [1], [2], [0, 0, 0, 1, 1, 2], [0], [0]>} : vector<4x8x8xf32>, vector<4x8x8xf32>, vector<4x8x8xf32> -> vector<4x8x8xf32>
    "tpu.trace_stop"() : () -> ()
    %40 = arith.addf %38, %39 : vector<4x8x8xf32>
    %c0_33 = arith.constant 0 : index
    %c0_34 = arith.constant 0 : index
    %c0_35 = arith.constant 0 : index
    %41 = vector.load %arg10[%c0_33, %c0_34, %c0_35] : memref<4x8x8xf32, #tpu.memory_space<vmem>>, vector<4x8x8xf32>
    tpu.vector_store %arg10[%c0_33, %c0_34, %c0_35], %40 {strides = array<i32>} : memref<4x8x8xf32, #tpu.memory_space<vmem>>, vector<4x8x8xf32>,
    %c0_36 = arith.constant 0 : index
    %c0_37 = arith.constant 0 : index
    %c0_38 = arith.constant 0 : index
    %42 = vector.load %arg8[%c0_36, %c0_37, %c0_38] : memref<4x8x1xf32, #tpu.memory_space<vmem>>, vector<4x8x1xf32>
    tpu.vector_store %arg8[%c0_36, %c0_37, %c0_38], %24 {strides = array<i32>} : memref<4x8x1xf32, #tpu.memory_space<vmem>>, vector<4x8x1xf32>,
    %c0_i32_39 = arith.constant 0 : i32
    %43 = arith.cmpi eq, %arg2, %c0_i32_39 : i32
    %44 = arith.extui %43 : i1 to i32
    %c0_i32_40 = arith.constant 0 : i32
    %45 = arith.cmpi ne, %44, %c0_i32_40 : i32
    scf.if %45 {
      %c0_41 = arith.constant 0 : index
      %c0_42 = arith.constant 0 : index
      %c0_43 = arith.constant 0 : index
      %46 = vector.load %arg9[%c0_41, %c0_42, %c0_43] : memref<4x8x1xf32, #tpu.memory_space<vmem>>, vector<4x8x1xf32>
      %47 = tpu.reciprocal %46 {approx = true} : vector<4x8x1xf32> -> vector<4x8x1xf32>
      %c0_44 = arith.constant 0 : index
      %c0_45 = arith.constant 0 : index
      %c0_46 = arith.constant 0 : index
      %48 = vector.load %arg10[%c0_44, %c0_45, %c0_46] : memref<4x8x8xf32, #tpu.memory_space<vmem>>, vector<4x8x8xf32>
      %49 = vector.broadcast %47 : vector<4x8x1xf32> to vector<4x8x8xf32>
      %50 = arith.mulf %48, %49 : vector<4x8x8xf32>
      %c0_47 = arith.constant 0 : index
      %c0_48 = arith.constant 0 : index
      %c0_49 = arith.constant 0 : index
      %c0_50 = arith.constant 0 : index
      %51 = vector.load %arg7[%c0_47, %c0_48, %c0_49, %c0_50] : memref<1x4x8x8xf32, #tpu.memory_space<vmem>>, vector<1x4x8x8xf32>
      %52 = vector.shape_cast %51 : vector<1x4x8x8xf32> to vector<4x8x8xf32>
      %53 = vector.shape_cast %50 : vector<4x8x8xf32> to vector<1x4x8x8xf32>
      tpu.vector_store %arg7[%c0_47, %c0_48, %c0_49, %c0_50], %53 {strides = array<i32>} : memref<1x4x8x8xf32, #tpu.memory_space<vmem>>, vector<1x4x8x8xf32>,
    } else {
    }
    return
  }
  func.func @transform_0(%arg0: i32, %arg1: i32, %arg2: i32) -> (i32, i32, i32, i32) {
    %c0_i32 = arith.constant 0 : i32
    %c0_i32_0 = arith.constant 0 : i32
    %c0_i32_1 = arith.constant 0 : i32
    return %arg0, %c0_i32, %arg1, %c0_i32_0 : i32, i32, i32, i32
  }
  func.func @transform_1(%arg0: i32, %arg1: i32, %arg2: i32) -> (i32, i32, i32, i32) {
    %c0_i32 = arith.constant 0 : i32
    %c0_i32_0 = arith.constant 0 : i32
    %c0_i32_1 = arith.constant 0 : i32
    return %arg0, %c0_i32, %arg2, %c0_i32_0 : i32, i32, i32, i32
  }
  func.func @transform_2(%arg0: i32, %arg1: i32, %arg2: i32) -> (i32, i32, i32, i32) {
    %c0_i32 = arith.constant 0 : i32
    %c0_i32_0 = arith.constant 0 : i32
    %c0_i32_1 = arith.constant 0 : i32
    return %arg0, %c0_i32, %arg2, %c0_i32_0 : i32, i32, i32, i32
  }
  func.func @transform_3(%arg0: i32, %arg1: i32, %arg2: i32) -> (i32, i32, i32) {
    %c0_i32 = arith.constant 0 : i32
    return %arg0, %arg1, %arg2 : i32, i32, i32
  }
  func.func @transform_4(%arg0: i32, %arg1: i32, %arg2: i32) -> (i32, i32, i32, i32) {
    %c0_i32 = arith.constant 0 : i32
    %c0_i32_0 = arith.constant 0 : i32
    %c0_i32_1 = arith.constant 0 : i32
    return %arg0, %c0_i32, %arg1, %c0_i32_0 : i32, i32, i32, i32
  }
}

module attributes {stable_mosaic.version = 11 : i64} {
  func.func @_linear_res_ln_kernel(%arg0: i32, %arg1: memref<16x32xf32, #tpu.memory_space<vmem>>, %arg2: memref<32x32xf32, #tpu.memory_space<vmem>>, %arg3: memref<1x32xf32, #tpu.memory_space<vmem>>, %arg4: memref<16x32xf32, #tpu.memory_space<vmem>>, %arg5: memref<1x32xf32, #tpu.memory_space<vmem>>, %arg6: memref<1x32xf32, #tpu.memory_space<vmem>>, %arg7: memref<16x32xf32, #tpu.memory_space<vmem>>) attributes {dimension_semantics = [#tpu.dimension_semantics<parallel>], iteration_bounds = array<i64: 1>, scalar_prefetch = 0 : i64, scratch_operands = 0 : i64, tpu.core_type = #tpu.core_type<tc>, window_params = [{transform_indices = @transform_0, window_bounds = array<i64: 16, 32>}, {pipeline_mode = #tpu.pipeline_mode<synchronous>, transform_indices = @transform_1, window_bounds = array<i64: 32, 32>}, {pipeline_mode = #tpu.pipeline_mode<synchronous>, transform_indices = @transform_2, window_bounds = array<i64: 1, 32>}, {transform_indices = @transform_3, window_bounds = array<i64: 16, 32>}, {pipeline_mode = #tpu.pipeline_mode<synchronous>, transform_indices = @transform_4, window_bounds = array<i64: 1, 32>}, {pipeline_mode = #tpu.pipeline_mode<synchronous>, transform_indices = @transform_5, window_bounds = array<i64: 1, 32>}, {transform_indices = @transform_6, window_bounds = array<i64: 16, 32>}]} {
    %c0 = arith.constant 0 : index
    %c0_0 = arith.constant 0 : index
    %0 = vector.load %arg1[%c0, %c0_0] : memref<16x32xf32, #tpu.memory_space<vmem>>, vector<16x32xf32>
    %c0_1 = arith.constant 0 : index
    %c0_2 = arith.constant 0 : index
    %1 = vector.load %arg2[%c0_1, %c0_2] : memref<32x32xf32, #tpu.memory_space<vmem>>, vector<32x32xf32>
    %cst = arith.constant dense<0.000000e+00> : vector<16x32xf32>
    %2 = tpu.matmul %0, %1, %cst {dimension_numbers = #tpu.dot_dimension_numbers<[1], [0], [0], [1], [0, 0, 1, 1], [], []>} : vector<16x32xf32>, vector<32x32xf32>, vector<16x32xf32> -> vector<16x32xf32>
    %c0_3 = arith.constant 0 : index
    %c0_4 = arith.constant 0 : index
    %3 = vector.load %arg3[%c0_3, %c0_4] : memref<1x32xf32, #tpu.memory_space<vmem>>, vector<1x32xf32>
    %4 = vector.broadcast %3 : vector<1x32xf32> to vector<16x32xf32>
    %5 = arith.addf %2, %4 : vector<16x32xf32>
    %c0_5 = arith.constant 0 : index
    %c0_6 = arith.constant 0 : index
    %6 = vector.load %arg4[%c0_5, %c0_6] : memref<16x32xf32, #tpu.memory_space<vmem>>, vector<16x32xf32>
    %7 = arith.addf %5, %6 : vector<16x32xf32>
    %cst_7 = arith.constant dense<0.000000e+00> : vector<16xf32>
    %8 = vector.multi_reduction <add>, %7, %cst_7 [1] : vector<16x32xf32> to vector<16xf32>
    %9 = vector.shape_cast %8 : vector<16xf32> to vector<16x1xf32>
    %cst_8 = arith.constant 3.200000e+01 : f32
    %10 = vector.broadcast %cst_8 : f32 to vector<16x1xf32>
    %11 = arith.divf %9, %10 : vector<16x1xf32>
    %12 = vector.broadcast %11 : vector<16x1xf32> to vector<16x32xf32>
    %13 = arith.subf %7, %12 : vector<16x32xf32>
    %14 = arith.mulf %13, %13 : vector<16x32xf32>
    %cst_9 = arith.constant dense<0.000000e+00> : vector<16xf32>
    %15 = vector.multi_reduction <add>, %14, %cst_9 [1] : vector<16x32xf32> to vector<16xf32>
    %16 = vector.shape_cast %15 : vector<16xf32> to vector<16x1xf32>
    %cst_10 = arith.constant 3.200000e+01 : f32
    %17 = vector.broadcast %cst_10 : f32 to vector<16x1xf32>
    %18 = arith.divf %16, %17 : vector<16x1xf32>
    %19 = vector.broadcast %11 : vector<16x1xf32> to vector<16x32xf32>
    %20 = arith.subf %7, %19 : vector<16x32xf32>
    %cst_11 = arith.constant 9.99999996E-13 : f32
    %21 = vector.broadcast %cst_11 : f32 to vector<16x1xf32>
    %22 = arith.addf %18, %21 : vector<16x1xf32>
    %23 = math.rsqrt %22 : vector<16x1xf32>
    %24 = vector.broadcast %23 : vector<16x1xf32> to vector<16x32xf32>
    %25 = arith.mulf %20, %24 : vector<16x32xf32>
    %c0_12 = arith.constant 0 : index
    %c0_13 = arith.constant 0 : index
    %26 = vector.load %arg5[%c0_12, %c0_13] : memref<1x32xf32, #tpu.memory_space<vmem>>, vector<1x32xf32>
    %27 = vector.broadcast %26 : vector<1x32xf32> to vector<16x32xf32>
    %28 = arith.mulf %25, %27 : vector<16x32xf32>
    %c0_14 = arith.constant 0 : index
    %c0_15 = arith.constant 0 : index
    %29 = vector.load %arg6[%c0_14, %c0_15] : memref<1x32xf32, #tpu.memory_space<vmem>>, vector<1x32xf32>
    %30 = vector.broadcast %29 : vector<1x32xf32> to vector<16x32xf32>
    %31 = arith.addf %28, %30 : vector<16x32xf32>
    %c0_16 = arith.constant 0 : index
    %c0_17 = arith.constant 0 : index
    %32 = vector.load %arg7[%c0_16, %c0_17] : memref<16x32xf32, #tpu.memory_space<vmem>>, vector<16x32xf32>
    tpu.vector_store %arg7[%c0_16, %c0_17], %31 {strides = array<i32>} : memref<16x32xf32, #tpu.memory_space<vmem>>, vector<16x32xf32>,
    return
  }
  func.func @transform_0(%arg0: i32) -> (i32, i32) {
    %c0_i32 = arith.constant 0 : i32
    %c0_i32_0 = arith.constant 0 : i32
    return %arg0, %c0_i32 : i32, i32
  }
  func.func @transform_1(%arg0: i32) -> (i32, i32) {
    %c0_i32 = arith.constant 0 : i32
    %c0_i32_0 = arith.constant 0 : i32
    %c0_i32_1 = arith.constant 0 : i32
    return %c0_i32, %c0_i32_0 : i32, i32
  }
  func.func @transform_2(%arg0: i32) -> (i32, i32) {
    %c0_i32 = arith.constant 0 : i32
    %c0_i32_0 = arith.constant 0 : i32
    %c0_i32_1 = arith.constant 0 : i32
    return %c0_i32, %c0_i32_0 : i32, i32
  }
  func.func @transform_3(%arg0: i32) -> (i32, i32) {
    %c0_i32 = arith.constant 0 : i32
    %c0_i32_0 = arith.constant 0 : i32
    return %arg0, %c0_i32 : i32, i32
  }
  func.func @transform_4(%arg0: i32) -> (i32, i32) {
    %c0_i32 = arith.constant 0 : i32
    %c0_i32_0 = arith.constant 0 : i32
    %c0_i32_1 = arith.constant 0 : i32
    return %c0_i32, %c0_i32_0 : i32, i32
  }
  func.func @transform_5(%arg0: i32) -> (i32, i32) {
    %c0_i32 = arith.constant 0 : i32
    %c0_i32_0 = arith.constant 0 : i32
    %c0_i32_1 = arith.constant 0 : i32
    return %c0_i32, %c0_i32_0 : i32, i32
  }
  func.func @transform_6(%arg0: i32) -> (i32, i32) {
    %c0_i32 = arith.constant 0 : i32
    %c0_i32_0 = arith.constant 0 : i32
    return %arg0, %c0_i32 : i32, i32
  }
}

module attributes {stable_mosaic.version = 11 : i64} {
  func.func @_matmul_kernel(%arg0: i32, %arg1: i32, %arg2: i32, %arg3: memref<16x32xf32, #tpu.memory_space<vmem>>, %arg4: memref<32x64xf32, #tpu.memory_space<vmem>>, %arg5: memref<1x64xf32, #tpu.memory_space<vmem>>, %arg6: memref<16x64xf32, #tpu.memory_space<vmem>>, %arg7: memref<16x64xf32, #tpu.memory_space<vmem>>) attributes {dimension_semantics = [#tpu.dimension_semantics<parallel>, #tpu.dimension_semantics<parallel>, #tpu.dimension_semantics<arbitrary>], iteration_bounds = array<i64: 1, 1, 1>, scalar_prefetch = 0 : i64, scratch_operands = 1 : i64, tpu.core_type = #tpu.core_type<tc>, window_params = [{transform_indices = @transform_0, window_bounds = array<i64: 16, 32>}, {transform_indices = @transform_1, window_bounds = array<i64: 32, 64>}, {transform_indices = @transform_2, window_bounds = array<i64: 1, 64>}, {transform_indices = @transform_3, window_bounds = array<i64: 16, 64>}]} {
    %c0_i32 = arith.constant 0 : i32
    %0 = arith.cmpi eq, %arg2, %c0_i32 : i32
    %1 = arith.extui %0 : i1 to i32
    %c0_i32_0 = arith.constant 0 : i32
    %2 = arith.cmpi ne, %1, %c0_i32_0 : i32
    scf.if %2 {
      %cst_10 = arith.constant 0.000000e+00 : f32
      %12 = vector.broadcast %cst_10 : f32 to vector<16x64xf32>
      %c0_11 = arith.constant 0 : index
      %c0_12 = arith.constant 0 : index
      %13 = vector.load %arg7[%c0_11, %c0_12] : memref<16x64xf32, #tpu.memory_space<vmem>>, vector<16x64xf32>
      tpu.vector_store %arg7[%c0_11, %c0_12], %12 {strides = array<i32>} : memref<16x64xf32, #tpu.memory_space<vmem>>, vector<16x64xf32>,
    } else {
    }
    %c0 = arith.constant 0 : index
    %c0_1 = arith.constant 0 : index
    %3 = vector.load %arg7[%c0, %c0_1] : memref<16x64xf32, #tpu.memory_space<vmem>>, vector<16x64xf32>
    %c0_2 = arith.constant 0 : index
    %c0_3 = arith.constant 0 : index
    %4 = vector.load %arg3[%c0_2, %c0_3] : memref<16x32xf32, #tpu.memory_space<vmem>>, vector<16x32xf32>
    %c0_4 = arith.constant 0 : index
    %c0_5 = arith.constant 0 : index
    %5 = vector.load %arg4[%c0_4, %c0_5] : memref<32x64xf32, #tpu.memory_space<vmem>>, vector<32x64xf32>
    %cst = arith.constant dense<0.000000e+00> : vector<16x64xf32>
    %6 = tpu.matmul %4, %5, %cst {dimension_numbers = #tpu.dot_dimension_numbers<[1], [0], [0], [1], [0, 0, 1, 1], [], []>} : vector<16x32xf32>, vector<32x64xf32>, vector<16x64xf32> -> vector<16x64xf32>
    %7 = arith.addf %3, %6 : vector<16x64xf32>
    %c0_6 = arith.constant 0 : index
    %c0_7 = arith.constant 0 : index
    %8 = vector.load %arg7[%c0_6, %c0_7] : memref<16x64xf32, #tpu.memory_space<vmem>>, vector<16x64xf32>
    tpu.vector_store %arg7[%c0_6, %c0_7], %7 {strides = array<i32>} : memref<16x64xf32, #tpu.memory_space<vmem>>, vector<16x64xf32>,
    %c0_i32_8 = arith.constant 0 : i32
    %9 = arith.cmpi eq, %arg2, %c0_i32_8 : i32
    %10 = arith.extui %9 : i1 to i32
    %c0_i32_9 = arith.constant 0 : i32
    %11 = arith.cmpi ne, %10, %c0_i32_9 : i32
    scf.if %11 {
      %c0_10 = arith.constant 0 : index
      %c0_11 = arith.constant 0 : index
      %12 = vector.load %arg7[%c0_10, %c0_11] : memref<16x64xf32, #tpu.memory_space<vmem>>, vector<16x64xf32>
      %c0_12 = arith.constant 0 : index
      %c0_13 = arith.constant 0 : index
      %13 = vector.load %arg5[%c0_12, %c0_13] : memref<1x64xf32, #tpu.memory_space<vmem>>, vector<1x64xf32>
      %14 = vector.broadcast %13 : vector<1x64xf32> to vector<16x64xf32>
      %15 = arith.addf %12, %14 : vector<16x64xf32>
      %cst_14 = arith.constant 0.000000e+00 : f32
      %16 = vector.broadcast %cst_14 : f32 to vector<16x64xf32>
      %17 = arith.maximumf %15, %16 : vector<16x64xf32>
      %c0_15 = arith.constant 0 : index
      %c0_16 = arith.constant 0 : index
      %18 = vector.load %arg6[%c0_15, %c0_16] : memref<16x64xf32, #tpu.memory_space<vmem>>, vector<16x64xf32>
      tpu.vector_store %arg6[%c0_15, %c0_16], %17 {strides = array<i32>} : memref<16x64xf32, #tpu.memory_space<vmem>>, vector<16x64xf32>,
    } else {
    }
    return
  }
  func.func @transform_0(%arg0: i32, %arg1: i32, %arg2: i32) -> (i32, i32) {
    %c0_i32 = arith.constant 0 : i32
    return %arg0, %arg2 : i32, i32
  }
  func.func @transform_1(%arg0: i32, %arg1: i32, %arg2: i32) -> (i32, i32) {
    %c0_i32 = arith.constant 0 : i32
    return %arg2, %arg1 : i32, i32
  }
  func.func @transform_2(%arg0: i32, %arg1: i32, %arg2: i32) -> (i32, i32) {
    %c0_i32 = arith.constant 0 : i32
    %c0_i32_0 = arith.constant 0 : i32
    return %c0_i32, %arg1 : i32, i32
  }
  func.func @transform_3(%arg0: i32, %arg1: i32, %arg2: i32) -> (i32, i32) {
    %c0_i32 = arith.constant 0 : i32
    return %arg0, %arg1 : i32, i32
  }
}

module attributes {stable_mosaic.version = 11 : i64} {
  func.func @_linear_res_ln_kernel(%arg0: i32, %arg1: memref<16x64xf32, #tpu.memory_space<vmem>>, %arg2: memref<64x32xf32, #tpu.memory_space<vmem>>, %arg3: memref<1x32xf32, #tpu.memory_space<vmem>>, %arg4: memref<16x32xf32, #tpu.memory_space<vmem>>, %arg5: memref<1x32xf32, #tpu.memory_space<vmem>>, %arg6: memref<1x32xf32, #tpu.memory_space<vmem>>, %arg7: memref<16x32xf32, #tpu.memory_space<vmem>>) attributes {dimension_semantics = [#tpu.dimension_semantics<parallel>], iteration_bounds = array<i64: 1>, scalar_prefetch = 0 : i64, scratch_operands = 0 : i64, tpu.core_type = #tpu.core_type<tc>, window_params = [{transform_indices = @transform_0, window_bounds = array<i64: 16, 64>}, {pipeline_mode = #tpu.pipeline_mode<synchronous>, transform_indices = @transform_1, window_bounds = array<i64: 64, 32>}, {pipeline_mode = #tpu.pipeline_mode<synchronous>, transform_indices = @transform_2, window_bounds = array<i64: 1, 32>}, {transform_indices = @transform_3, window_bounds = array<i64: 16, 32>}, {pipeline_mode = #tpu.pipeline_mode<synchronous>, transform_indices = @transform_4, window_bounds = array<i64: 1, 32>}, {pipeline_mode = #tpu.pipeline_mode<synchronous>, transform_indices = @transform_5, window_bounds = array<i64: 1, 32>}, {transform_indices = @transform_6, window_bounds = array<i64: 16, 32>}]} {
    %c0 = arith.constant 0 : index
    %c0_0 = arith.constant 0 : index
    %0 = vector.load %arg1[%c0, %c0_0] : memref<16x64xf32, #tpu.memory_space<vmem>>, vector<16x64xf32>
    %c0_1 = arith.constant 0 : index
    %c0_2 = arith.constant 0 : index
    %1 = vector.load %arg2[%c0_1, %c0_2] : memref<64x32xf32, #tpu.memory_space<vmem>>, vector<64x32xf32>
    %cst = arith.constant dense<0.000000e+00> : vector<16x32xf32>
    %2 = tpu.matmul %0, %1, %cst {dimension_numbers = #tpu.dot_dimension_numbers<[1], [0], [0], [1], [0, 0, 1, 1], [], []>} : vector<16x64xf32>, vector<64x32xf32>, vector<16x32xf32> -> vector<16x32xf32>
    %c0_3 = arith.constant 0 : index
    %c0_4 = arith.constant 0 : index
    %3 = vector.load %arg3[%c0_3, %c0_4] : memref<1x32xf32, #tpu.memory_space<vmem>>, vector<1x32xf32>
    %4 = vector.broadcast %3 : vector<1x32xf32> to vector<16x32xf32>
    %5 = arith.addf %2, %4 : vector<16x32xf32>
    %c0_5 = arith.constant 0 : index
    %c0_6 = arith.constant 0 : index
    %6 = vector.load %arg4[%c0_5, %c0_6] : memref<16x32xf32, #tpu.memory_space<vmem>>, vector<16x32xf32>
    %7 = arith.addf %5, %6 : vector<16x32xf32>
    %cst_7 = arith.constant dense<0.000000e+00> : vector<16xf32>
    %8 = vector.multi_reduction <add>, %7, %cst_7 [1] : vector<16x32xf32> to vector<16xf32>
    %9 = vector.shape_cast %8 : vector<16xf32> to vector<16x1xf32>
    %cst_8 = arith.constant 3.200000e+01 : f32
    %10 = vector.broadcast %cst_8 : f32 to vector<16x1xf32>
    %11 = arith.divf %9, %10 : vector<16x1xf32>
    %12 = vector.broadcast %11 : vector<16x1xf32> to vector<16x32xf32>
    %13 = arith.subf %7, %12 : vector<16x32xf32>
    %14 = arith.mulf %13, %13 : vector<16x32xf32>
    %cst_9 = arith.constant dense<0.000000e+00> : vector<16xf32>
    %15 = vector.multi_reduction <add>, %14, %cst_9 [1] : vector<16x32xf32> to vector<16xf32>
    %16 = vector.shape_cast %15 : vector<16xf32> to vector<16x1xf32>
    %cst_10 = arith.constant 3.200000e+01 : f32
    %17 = vector.broadcast %cst_10 : f32 to vector<16x1xf32>
    %18 = arith.divf %16, %17 : vector<16x1xf32>
    %19 = vector.broadcast %11 : vector<16x1xf32> to vector<16x32xf32>
    %20 = arith.subf %7, %19 : vector<16x32xf32>
    %cst_11 = arith.constant 9.99999996E-13 : f32
    %21 = vector.broadcast %cst_11 : f32 to vector<16x1xf32>
    %22 = arith.addf %18, %21 : vector<16x1xf32>
    %23 = math.rsqrt %22 : vector<16x1xf32>
    %24 = vector.broadcast %23 : vector<16x1xf32> to vector<16x32xf32>
    %25 = arith.mulf %20, %24 : vector<16x32xf32>
    %c0_12 = arith.constant 0 : index
    %c0_13 = arith.constant 0 : index
    %26 = vector.load %arg5[%c0_12, %c0_13] : memref<1x32xf32, #tpu.memory_space<vmem>>, vector<1x32xf32>
    %27 = vector.broadcast %26 : vector<1x32xf32> to vector<16x32xf32>
    %28 = arith.mulf %25, %27 : vector<16x32xf32>
    %c0_14 = arith.constant 0 : index
    %c0_15 = arith.constant 0 : index
    %29 = vector.load %arg6[%c0_14, %c0_15] : memref<1x32xf32, #tpu.memory_space<vmem>>, vector<1x32xf32>
    %30 = vector.broadcast %29 : vector<1x32xf32> to vector<16x32xf32>
    %31 = arith.addf %28, %30 : vector<16x32xf32>
    %c0_16 = arith.constant 0 : index
    %c0_17 = arith.constant 0 : index
    %32 = vector.load %arg7[%c0_16, %c0_17] : memref<16x32xf32, #tpu.memory_space<vmem>>, vector<16x32xf32>
    tpu.vector_store %arg7[%c0_16, %c0_17], %31 {strides = array<i32>} : memref<16x32xf32, #tpu.memory_space<vmem>>, vector<16x32xf32>,
    return
  }
  func.func @transform_0(%arg0: i32) -> (i32, i32) {
    %c0_i32 = arith.constant 0 : i32
    %c0_i32_0 = arith.constant 0 : i32
    return %arg0, %c0_i32 : i32, i32
  }
  func.func @transform_1(%arg0: i32) -> (i32, i32) {
    %c0_i32 = arith.constant 0 : i32
    %c0_i32_0 = arith.constant 0 : i32
    %c0_i32_1 = arith.constant 0 : i32
    return %c0_i32, %c0_i32_0 : i32, i32
  }
  func.func @transform_2(%arg0: i32) -> (i32, i32) {
    %c0_i32 = arith.constant 0 : i32
    %c0_i32_0 = arith.constant 0 : i32
    %c0_i32_1 = arith.constant 0 : i32
    return %c0_i32, %c0_i32_0 : i32, i32
  }
  func.func @transform_3(%arg0: i32) -> (i32, i32) {
    %c0_i32 = arith.constant 0 : i32
    %c0_i32_0 = arith.constant 0 : i32
    return %arg0, %c0_i32 : i32, i32
  }
  func.func @transform_4(%arg0: i32) -> (i32, i32) {
    %c0_i32 = arith.constant 0 : i32
    %c0_i32_0 = arith.constant 0 : i32
    %c0_i32_1 = arith.constant 0 : i32
    return %c0_i32, %c0_i32_0 : i32, i32
  }
  func.func @transform_5(%arg0: i32) -> (i32, i32) {
    %c0_i32 = arith.constant 0 : i32
    %c0_i32_0 = arith.constant 0 : i32
    %c0_i32_1 = arith.constant 0 : i32
    return %c0_i32, %c0_i32_0 : i32, i32
  }
  func.func @transform_6(%arg0: i32) -> (i32, i32) {
    %c0_i32 = arith.constant 0 : i32
    %c0_i32_0 = arith.constant 0 : i32
    return %arg0, %c0_i32 : i32, i32
  }
}

module attributes {stable_mosaic.version = 11 : i64} {
  func.func @_matmul_kernel(%arg0: i32, %arg1: i32, %arg2: i32, %arg3: memref<16x32xf32, #tpu.memory_space<vmem>>, %arg4: memref<32x64xf32, #tpu.memory_space<vmem>>, %arg5: memref<1x64xf32, #tpu.memory_space<vmem>>, %arg6: memref<16x64xf32, #tpu.memory_space<vmem>>, %arg7: memref<16x64xf32, #tpu.memory_space<vmem>>) attributes {dimension_semantics = [#tpu.dimension_semantics<parallel>, #tpu.dimension_semantics<parallel>, #tpu.dimension_semantics<arbitrary>], iteration_bounds = array<i64: 1, 1, 1>, scalar_prefetch = 0 : i64, scratch_operands = 1 : i64, tpu.core_type = #tpu.core_type<tc>, window_params = [{transform_indices = @transform_0, window_bounds = array<i64: 16, 32>}, {transform_indices = @transform_1, window_bounds = array<i64: 32, 64>}, {transform_indices = @transform_2, window_bounds = array<i64: 1, 64>}, {transform_indices = @transform_3, window_bounds = array<i64: 16, 64>}]} {
    %c0_i32 = arith.constant 0 : i32
    %0 = arith.cmpi eq, %arg2, %c0_i32 : i32
    %1 = arith.extui %0 : i1 to i32
    %c0_i32_0 = arith.constant 0 : i32
    %2 = arith.cmpi ne, %1, %c0_i32_0 : i32
    scf.if %2 {
      %cst_10 = arith.constant 0.000000e+00 : f32
      %12 = vector.broadcast %cst_10 : f32 to vector<16x64xf32>
      %c0_11 = arith.constant 0 : index
      %c0_12 = arith.constant 0 : index
      %13 = vector.load %arg7[%c0_11, %c0_12] : memref<16x64xf32, #tpu.memory_space<vmem>>, vector<16x64xf32>
      tpu.vector_store %arg7[%c0_11, %c0_12], %12 {strides = array<i32>} : memref<16x64xf32, #tpu.memory_space<vmem>>, vector<16x64xf32>,
    } else {
    }
    %c0 = arith.constant 0 : index
    %c0_1 = arith.constant 0 : index
    %3 = vector.load %arg7[%c0, %c0_1] : memref<16x64xf32, #tpu.memory_space<vmem>>, vector<16x64xf32>
    %c0_2 = arith.constant 0 : index
    %c0_3 = arith.constant 0 : index
    %4 = vector.load %arg3[%c0_2, %c0_3] : memref<16x32xf32, #tpu.memory_space<vmem>>, vector<16x32xf32>
    %c0_4 = arith.constant 0 : index
    %c0_5 = arith.constant 0 : index
    %5 = vector.load %arg4[%c0_4, %c0_5] : memref<32x64xf32, #tpu.memory_space<vmem>>, vector<32x64xf32>
    %cst = arith.constant dense<0.000000e+00> : vector<16x64xf32>
    %6 = tpu.matmul %4, %5, %cst {dimension_numbers = #tpu.dot_dimension_numbers<[1], [0], [0], [1], [0, 0, 1, 1], [], []>} : vector<16x32xf32>, vector<32x64xf32>, vector<16x64xf32> -> vector<16x64xf32>
    %7 = arith.addf %3, %6 : vector<16x64xf32>
    %c0_6 = arith.constant 0 : index
    %c0_7 = arith.constant 0 : index
    %8 = vector.load %arg7[%c0_6, %c0_7] : memref<16x64xf32, #tpu.memory_space<vmem>>, vector<16x64xf32>
    tpu.vector_store %arg7[%c0_6, %c0_7], %7 {strides = array<i32>} : memref<16x64xf32, #tpu.memory_space<vmem>>, vector<16x64xf32>,
    %c0_i32_8 = arith.constant 0 : i32
    %9 = arith.cmpi eq, %arg2, %c0_i32_8 : i32
    %10 = arith.extui %9 : i1 to i32
    %c0_i32_9 = arith.constant 0 : i32
    %11 = arith.cmpi ne, %10, %c0_i32_9 : i32
    scf.if %11 {
      %c0_10 = arith.constant 0 : index
      %c0_11 = arith.constant 0 : index
      %12 = vector.load %arg7[%c0_10, %c0_11] : memref<16x64xf32, #tpu.memory_space<vmem>>, vector<16x64xf32>
      %c0_12 = arith.constant 0 : index
      %c0_13 = arith.constant 0 : index
      %13 = vector.load %arg5[%c0_12, %c0_13] : memref<1x64xf32, #tpu.memory_space<vmem>>, vector<1x64xf32>
      %14 = vector.broadcast %13 : vector<1x64xf32> to vector<16x64xf32>
      %15 = arith.addf %12, %14 : vector<16x64xf32>
      %c0_14 = arith.constant 0 : index
      %c0_15 = arith.constant 0 : index
      %16 = vector.load %arg6[%c0_14, %c0_15] : memref<16x64xf32, #tpu.memory_space<vmem>>, vector<16x64xf32>
      tpu.vector_store %arg6[%c0_14, %c0_15], %15 {strides = array<i32>} : memref<16x64xf32, #tpu.memory_space<vmem>>, vector<16x64xf32>,
    } else {
    }
    return
  }
  func.func @transform_0(%arg0: i32, %arg1: i32, %arg2: i32) -> (i32, i32) {
    %c0_i32 = arith.constant 0 : i32
    return %arg0, %arg2 : i32, i32
  }
  func.func @transform_1(%arg0: i32, %arg1: i32, %arg2: i32) -> (i32, i32) {
    %c0_i32 = arith.constant 0 : i32
    return %arg2, %arg1 : i32, i32
  }
  func.func @transform_2(%arg0: i32, %arg1: i32, %arg2: i32) -> (i32, i32) {
    %c0_i32 = arith.constant 0 : i32
    %c0_i32_0 = arith.constant 0 : i32
    return %c0_i32, %arg1 : i32, i32
  }
  func.func @transform_3(%arg0: i32, %arg1: i32, %arg2: i32) -> (i32, i32) {
    %c0_i32 = arith.constant 0 : i32
    return %arg0, %arg1 : i32, i32
  }
}

module attributes {stable_mosaic.version = 11 : i64} {
  func.func @_matmul_kernel(%arg0: i32, %arg1: i32, %arg2: i32, %arg3: memref<16x32xf32, #tpu.memory_space<vmem>>, %arg4: memref<32x32xf32, #tpu.memory_space<vmem>>, %arg5: memref<1x32xf32, #tpu.memory_space<vmem>>, %arg6: memref<16x32xf32, #tpu.memory_space<vmem>>, %arg7: memref<16x32xf32, #tpu.memory_space<vmem>>) attributes {dimension_semantics = [#tpu.dimension_semantics<parallel>, #tpu.dimension_semantics<parallel>, #tpu.dimension_semantics<arbitrary>], iteration_bounds = array<i64: 1, 1, 1>, scalar_prefetch = 0 : i64, scratch_operands = 1 : i64, tpu.core_type = #tpu.core_type<tc>, window_params = [{transform_indices = @transform_0, window_bounds = array<i64: 16, 32>}, {transform_indices = @transform_1, window_bounds = array<i64: 32, 32>}, {transform_indices = @transform_2, window_bounds = array<i64: 1, 32>}, {transform_indices = @transform_3, window_bounds = array<i64: 16, 32>}]} {
    %c0_i32 = arith.constant 0 : i32
    %0 = arith.cmpi eq, %arg2, %c0_i32 : i32
    %1 = arith.extui %0 : i1 to i32
    %c0_i32_0 = arith.constant 0 : i32
    %2 = arith.cmpi ne, %1, %c0_i32_0 : i32
    scf.if %2 {
      %cst_10 = arith.constant 0.000000e+00 : f32
      %12 = vector.broadcast %cst_10 : f32 to vector<16x32xf32>
      %c0_11 = arith.constant 0 : index
      %c0_12 = arith.constant 0 : index
      %13 = vector.load %arg7[%c0_11, %c0_12] : memref<16x32xf32, #tpu.memory_space<vmem>>, vector<16x32xf32>
      tpu.vector_store %arg7[%c0_11, %c0_12], %12 {strides = array<i32>} : memref<16x32xf32, #tpu.memory_space<vmem>>, vector<16x32xf32>,
    } else {
    }
    %c0 = arith.constant 0 : index
    %c0_1 = arith.constant 0 : index
    %3 = vector.load %arg7[%c0, %c0_1] : memref<16x32xf32, #tpu.memory_space<vmem>>, vector<16x32xf32>
    %c0_2 = arith.constant 0 : index
    %c0_3 = arith.constant 0 : index
    %4 = vector.load %arg3[%c0_2, %c0_3] : memref<16x32xf32, #tpu.memory_space<vmem>>, vector<16x32xf32>
    %c0_4 = arith.constant 0 : index
    %c0_5 = arith.constant 0 : index
    %5 = vector.load %arg4[%c0_4, %c0_5] : memref<32x32xf32, #tpu.memory_space<vmem>>, vector<32x32xf32>
    %cst = arith.constant dense<0.000000e+00> : vector<16x32xf32>
    %6 = tpu.matmul %4, %5, %cst {dimension_numbers = #tpu.dot_dimension_numbers<[1], [0], [0], [1], [0, 0, 1, 1], [], []>} : vector<16x32xf32>, vector<32x32xf32>, vector<16x32xf32> -> vector<16x32xf32>
    %7 = arith.addf %3, %6 : vector<16x32xf32>
    %c0_6 = arith.constant 0 : index
    %c0_7 = arith.constant 0 : index
    %8 = vector.load %arg7[%c0_6, %c0_7] : memref<16x32xf32, #tpu.memory_space<vmem>>, vector<16x32xf32>
    tpu.vector_store %arg7[%c0_6, %c0_7], %7 {strides = array<i32>} : memref<16x32xf32, #tpu.memory_space<vmem>>, vector<16x32xf32>,
    %c0_i32_8 = arith.constant 0 : i32
    %9 = arith.cmpi eq, %arg2, %c0_i32_8 : i32
    %10 = arith.extui %9 : i1 to i32
    %c0_i32_9 = arith.constant 0 : i32
    %11 = arith.cmpi ne, %10, %c0_i32_9 : i32
    scf.if %11 {
      %c0_10 = arith.constant 0 : index
      %c0_11 = arith.constant 0 : index
      %12 = vector.load %arg7[%c0_10, %c0_11] : memref<16x32xf32, #tpu.memory_space<vmem>>, vector<16x32xf32>
      %c0_12 = arith.constant 0 : index
      %c0_13 = arith.constant 0 : index
      %13 = vector.load %arg5[%c0_12, %c0_13] : memref<1x32xf32, #tpu.memory_space<vmem>>, vector<1x32xf32>
      %14 = vector.broadcast %13 : vector<1x32xf32> to vector<16x32xf32>
      %15 = arith.addf %12, %14 : vector<16x32xf32>
      %c0_14 = arith.constant 0 : index
      %c0_15 = arith.constant 0 : index
      %16 = vector.load %arg6[%c0_14, %c0_15] : memref<16x32xf32, #tpu.memory_space<vmem>>, vector<16x32xf32>
      tpu.vector_store %arg6[%c0_14, %c0_15], %15 {strides = array<i32>} : memref<16x32xf32, #tpu.memory_space<vmem>>, vector<16x32xf32>,
    } else {
    }
    return
  }
  func.func @transform_0(%arg0: i32, %arg1: i32, %arg2: i32) -> (i32, i32) {
    %c0_i32 = arith.constant 0 : i32
    return %arg0, %arg2 : i32, i32
  }
  func.func @transform_1(%arg0: i32, %arg1: i32, %arg2: i32) -> (i32, i32) {
    %c0_i32 = arith.constant 0 : i32
    return %arg2, %arg1 : i32, i32
  }
  func.func @transform_2(%arg0: i32, %arg1: i32, %arg2: i32) -> (i32, i32) {
    %c0_i32 = arith.constant 0 : i32
    %c0_i32_0 = arith.constant 0 : i32
    return %c0_i32, %arg1 : i32, i32
  }
  func.func @transform_3(%arg0: i32, %arg1: i32, %arg2: i32) -> (i32, i32) {
    %c0_i32 = arith.constant 0 : i32
    return %arg0, %arg1 : i32, i32
  }
}

</mosaic_0001>

<bundles_post_ra>
// kernel: transformer_forward.39
= control target key start
LH: loop header
LB: loop body
LE: loop exit
PB: predicated region body
PF: predicated region fallthrough
CT: control target
= control target key end

     0   :  { %vm18_vm0 = vcmask 785408   ;;  %v89_v2 = vmov 0.0   ;;  %vm29_vm1 = vcmask 261120   ;;  %s143_s1 = inlined_call_operand.vmem [shape: f32[32,96], index: 1, kind: input, shape index: {}]   ;;  %s144_s2 = inlined_call_operand.vmem [shape: f32[1,96], index: 2, kind: input, shape index: {}]   ;;  %s145_s0 = inlined_call_operand.vmem [shape: f32[16,32], index: 0, kind: input, shape index: {}]   ;;  %s146_s3 = inlined_call_operand.vmem [shape: f32[16,96], index: 3, kind: output, shape index: {}]  }
   0x1   :  { %v28_v0 = vld [vmem:[%s143_s1 + $0x18] sm:$0xff]  ;;  %v27_v1 = vld [vmem:[%s143_s1 + $0x10] sm:$0xff]  ;;  %19 = vst.msk [vmem:[#allocation2] sm:$0xff] %vm18_vm0, %v89_v2  ;;  %v26_v3 = vld [vmem:[%s143_s1 + $0x8] sm:$0xff] }
   0x2   :  { %48 = vmatpush.msra.mxu0 %v28_v0  ;;  %83 = vmatpush.msra.mxu1 %v28_v0  ;;  %20 = vst.msk [vmem:[#allocation2 + $0x8] sm:$0xff] %vm18_vm0, %v89_v2  ;;  %v25_v4 = vld [vmem:[%s143_s1] sm:$0xff]  ;;  %v24_v6 = vld [vmem:[%s145_s0 + $0x8] sm:$0xff] }
   0x3   :  { %v23_v5 = vld [vmem:[%s145_s0] sm:$0xff] }
   0x4   :  { %49 = vmatpush.msra.mxu0 %v27_v1  ;;  %84 = vmatpush.msra.mxu1 %v27_v1  ;;  %v88_v13 = vld [vmem:[%s144_s2] ss:$0 sm:$0xff] }
   0x6   :  { %50 = vmatpush.msra.mxu0 %v26_v3  ;;  %85 = vmatpush.msra.mxu1 %v26_v3 }
   0x8   :  { %51 = vmatpush.msra.mxu0 %v25_v4  ;;  %86 = vmatpush.msra.mxu1 %v25_v4  ;;  %v21_v7 = vld [vmem:[#allocation2] sm:$0xff] }
   0x9   :  { %81 = vmatmul.msk.f32.vlgmr.msra.gmra.mxu0 %vm29_vm1, %v23_v5  ;;  %82 = vmatmul.msk.f32.vlgmr.msra.gmra.mxu1 %vm29_vm1, %v24_v6  ;;  %v22_v8 = vld [vmem:[#allocation2 + $0x8] sm:$0xff] }
  0x86   :  { %v53_v9 = vpop.f32.mrf.mxu0  ;;  %v56_v10 = vpop.f32.mrf.mxu1 }
  0x87   :  { %v59_v11 = vadd.f32 %v53_v9, %v21_v7  ;;  %v60_v12 = vadd.f32 %v56_v10, %v22_v8 }
  0x89   :  { %62 = vst.msk [vmem:[#allocation2] sm:$0xff] %vm18_vm0, %v59_v11 }
  0x8a   :  { %63 = vst.msk [vmem:[#allocation2 + $0x8] sm:$0xff] %vm18_vm0, %v60_v12 }
  0x90   :  { %v67_v14 = vld [vmem:[#allocation2] sm:$0xff] }
  0x91   :  { %v73_v15 = vadd.f32 %v88_v13, %v67_v14  ;;  %v68_v16 = vld [vmem:[#allocation2 + $0x8] sm:$0xff] }
  0x92   :  { %v74_v17 = vadd.f32 %v88_v13, %v68_v16 }
  0x93   :  { %75 = vst.msk [vmem:[%s146_s3] sm:$0xff] %vm18_vm0, %v73_v15 }
  0x94   :  { %76 = vst.msk [vmem:[%s146_s3 + $0x8] sm:$0xff] %vm18_vm0, %v74_v17 }

// kernel: transformer_forward.42
= control target key start
LH: loop header
LB: loop body
LE: loop exit
PB: predicated region body
PF: predicated region fallthrough
CT: control target
= control target key end

     0   :  { %vm18_vm0 = vcmask 261120   ;;  %v88_v2 = vmov 0.0   ;;  %s144_s1 = inlined_call_operand.vmem [shape: f32[32,32], index: 1, kind: input, shape index: {}]   ;;  %s145_s2 = inlined_call_operand.vmem [shape: f32[1,32], index: 2, kind: input, shape index: {}]   ;;  %s146_s0 = inlined_call_operand.vmem [shape: f32[16,32], index: 0, kind: input, shape index: {}]   ;;  %s147_s3 = inlined_call_operand.vmem [shape: f32[16,32], index: 3, kind: output, shape index: {}]  }
   0x1   :  { %v28_v0 = vld [vmem:[%s144_s1 + $0x18] sm:$0xff]  ;;  %v27_v1 = vld [vmem:[%s144_s1 + $0x10] sm:$0xff]  ;;  %19 = vst.msk [vmem:[#allocation2] sm:$0xff] %vm18_vm0, %v88_v2  ;;  %v26_v3 = vld [vmem:[%s144_s1 + $0x8] sm:$0xff] }
   0x2   :  { %48 = vmatpush.msra.mxu0 %v28_v0  ;;  %82 = vmatpush.msra.mxu1 %v28_v0  ;;  %20 = vst.msk [vmem:[#allocation2 + $0x8] sm:$0xff] %vm18_vm0, %v88_v2  ;;  %v25_v4 = vld [vmem:[%s144_s1] sm:$0xff]  ;;  %v24_v6 = vld [vmem:[%s146_s0 + $0x8] sm:$0xff] }
   0x3   :  { %v23_v5 = vld [vmem:[%s146_s0] sm:$0xff] }
   0x4   :  { %49 = vmatpush.msra.mxu0 %v27_v1  ;;  %83 = vmatpush.msra.mxu1 %v27_v1  ;;  %v87_v13 = vld [vmem:[%s145_s2] ss:$0 sm:$0xff] }
   0x6   :  { %50 = vmatpush.msra.mxu0 %v26_v3  ;;  %84 = vmatpush.msra.mxu1 %v26_v3 }
   0x8   :  { %51 = vmatpush.msra.mxu0 %v25_v4  ;;  %85 = vmatpush.msra.mxu1 %v25_v4  ;;  %v21_v7 = vld [vmem:[#allocation2] sm:$0xff] }
   0x9   :  { %80 = vmatmul.msk.f32.vlgmr.msra.gmra.mxu0 %vm18_vm0, %v23_v5  ;;  %81 = vmatmul.msk.f32.vlgmr.msra.gmra.mxu1 %vm18_vm0, %v24_v6  ;;  %v22_v8 = vld [vmem:[#allocation2 + $0x8] sm:$0xff] }
  0x86   :  { %v53_v9 = vpop.f32.mrf.mxu0  ;;  %v56_v10 = vpop.f32.mrf.mxu1 }
  0x87   :  { %v59_v11 = vadd.f32 %v53_v9, %v21_v7  ;;  %v60_v12 = vadd.f32 %v56_v10, %v22_v8 }
  0x89   :  { %61 = vst.msk [vmem:[#allocation2] sm:$0xff] %vm18_vm0, %v59_v11 }
  0x8a   :  { %62 = vst.msk [vmem:[#allocation2 + $0x8] sm:$0xff] %vm18_vm0, %v60_v12 }
  0x90   :  { %v66_v14 = vld [vmem:[#allocation2] sm:$0xff] }
  0x91   :  { %v72_v15 = vadd.f32 %v87_v13, %v66_v14  ;;  %v67_v16 = vld [vmem:[#allocation2 + $0x8] sm:$0xff] }
  0x92   :  { %v73_v17 = vadd.f32 %v87_v13, %v67_v16 }
  0x93   :  { %74 = vst.msk [vmem:[%s147_s3] sm:$0xff] %vm18_vm0, %v72_v15 }
  0x94   :  { %75 = vst.msk [vmem:[%s147_s3 + $0x8] sm:$0xff] %vm18_vm0, %v73_v17 }

// kernel: transformer_forward.41
= control target key start
LH: loop header
LB: loop body
LE: loop exit
PB: predicated region body
PF: predicated region fallthrough
CT: control target
= control target key end

     0   :  { %vm33_vm0 = vcmask 261120   ;;  %v152_v17 = vmov 32.0   ;;  %s235_s1 = inlined_call_operand.vmem [shape: f32[32,32], index: 1, kind: input, shape index: {}]   ;;  %s236_s2 = inlined_call_operand.vmem [shape: f32[1,32], index: 2, kind: input, shape index: {}]   ;;  %s237_s0 = inlined_call_operand.vmem [shape: f32[16,32], index: 0, kind: input, shape index: {}]   ;;  %s238_s3 = inlined_call_operand.vmem [shape: f32[16,32], index: 3, kind: input, shape index: {}]   ;;  %s239_s4 = inlined_call_operand.vmem [shape: f32[1,32], index: 4, kind: input, shape index: {}]   ;;  %s240_s5 = inlined_call_operand.vmem [shape: f32[1,32], index: 5, kind: input, shape index: {}]   ;;  %s241_s6 = inlined_call_operand.vmem [shape: f32[16,32], index: 6, kind: output, shape index: {}]  }
   0x1   :  { %v28_v0 = vld [vmem:[%s235_s1 + $0x18] sm:$0xff]  ;;  %v27_v1 = vld [vmem:[%s235_s1 + $0x10] sm:$0xff]  ;;  %v26_v2 = vld [vmem:[%s235_s1 + $0x8] sm:$0xff]  ;;  %146 = vrcp.f32 %v152_v17 }
   0x2   :  { %52 = vmatpush.msra.mxu0 %v28_v0  ;;  %138 = vmatpush.msra.mxu1 %v28_v0  ;;  %v25_v3 = vld [vmem:[%s235_s1] sm:$0xff]  ;;  %v24_v5 = vld [vmem:[%s237_s0 + $0x8] sm:$0xff] }
   0x3   :  { %v23_v4 = vld [vmem:[%s237_s0] sm:$0xff]  ;;  %v64_v13 = vld [vmem:[%s238_s3 + $0x8] sm:$0xff] }
   0x4   :  { %53 = vmatpush.msra.mxu0 %v27_v1  ;;  %139 = vmatpush.msra.mxu1 %v27_v1  ;;  %v143_v6 = vld [vmem:[%s236_s2] ss:$0 sm:$0xff] }
   0x5   :  { %v63_v8 = vld [vmem:[%s238_s3] sm:$0xff] }
   0x6   :  { %54 = vmatpush.msra.mxu0 %v26_v2  ;;  %140 = vmatpush.msra.mxu1 %v26_v2  ;;  %v144_v48 = vld [vmem:[%s239_s4] ss:$0 sm:$0xff] }
   0x7   :  { %v147_v18 = vpop.eup %146  ;;  %v145_v51 = vld [vmem:[%s240_s5] ss:$0 sm:$0xff] }
   0x8   :  { %55 = vmatpush.msra.mxu0 %v25_v3  ;;  %141 = vmatpush.msra.mxu1 %v25_v3  ;;  %v74_v19 = vmul.f32 32.0, %v147_v18  ;;  %vm78_vm1 = vweird.f32 %v147_v18 }
   0x9   :  { %136 = vmatmul.msk.f32.vlgmr.msra.gmra.mxu0 %vm33_vm0, %v23_v4  ;;  %137 = vmatmul.msk.f32.vlgmr.msra.gmra.mxu1 %vm33_vm0, %v24_v5 }
   0xa   :  { %v75_v20 = vsub.f32 1.0, %v74_v19 }
   0xc   :  { %v76_v21 = vmul.f32 %v147_v18, %v75_v20 }
   0xe   :  { %v77_v22 = vadd.f32 %v147_v18, %v76_v21 }
  0x10   :  { %v79_v23 = vsel %vm78_vm1, %v147_v18, %v77_v22 }
  0x86   :  { %v57_v7 = vpop.f32.mrf.mxu0  ;;  %v60_v9 = vpop.f32.mrf.mxu1 }
  0x87   :  { %v58_v10 = vadd.f32 %v143_v6, %v57_v7  ;;  %v61_v12 = vadd.f32 %v143_v6, %v60_v9 }
  0x89   :  { %v65_v11 = vadd.f32 %v63_v8, %v58_v10  ;;  %v66_v15 = vadd.f32 %v64_v13, %v61_v12 }
  0x8b   :  { %v67_v14 = vsel %vm33_vm0, %v65_v11, 0.0  ;;  %v70_v16 = vsel %vm33_vm0, %v66_v15, 0.0 }
  0x8c   :  { %68 = vadd.xlane.f32.xlu0 %v67_v14 }
  0x94   :  { %71 = vadd.xlane.f32.xlu0 %v70_v16 }
  0xff   :  { %v69_v24 = vpop.xlane.xlu0 %68 }
 0x100   :  { %v80_v25 = vmul.f32 %v79_v23, %v69_v24 }
 0x102   :  { %v82_v26 = vsub.f32 %v65_v11, %v80_v25 }
 0x104   :  { %v84_v27 = vmul.f32 %v82_v26, %v82_v26 }
 0x106   :  { %v86_v28 = vsel %vm33_vm0, %v84_v27, 0.0 }
 0x107   :  { %87 = vadd.xlane.f32.xlu1 %v86_v28  ;;  %v72_v29 = vpop.xlane.xlu0 %71 }
 0x108   :  { %v81_v30 = vmul.f32 %v79_v23, %v72_v29 }
 0x10a   :  { %v83_v31 = vsub.f32 %v66_v15, %v81_v30 }
 0x10c   :  { %v85_v32 = vmul.f32 %v83_v31, %v83_v31 }
 0x10e   :  { %v89_v33 = vsel %vm33_vm0, %v85_v32, 0.0 }
 0x10f   :  { %90 = vadd.xlane.f32.xlu1 %v89_v33 }
 0x17a   :  { %v88_v34 = vpop.xlane.xlu1 %87 }
 0x17b   :  { %v92_v35 = vmul.f32 %v88_v34, %v79_v23 }
 0x17d   :  { %v94_v36 = vadd.f32 1e-12, %v92_v35 }
 0x17f   :  { %148 = vrsqrt.f32 %v94_v36  ;;  %vm102_vm3 = vweird.f32 %v94_v36 }
 0x182   :  { %v91_v37 = vpop.xlane.xlu1 %90 }
 0x183   :  { %v93_v38 = vmul.f32 %v91_v37, %v79_v23 }
 0x185   :  { %v149_v39 = vpop.eup %148  ;;  %v95_v40 = vadd.f32 1e-12, %v93_v38 }
 0x186   :  { %v97_v41 = vmul.f32 %v149_v39, %v94_v36  ;;  %vm103_vm2 = vweird.f32 %v149_v39 }
 0x187   :  { %150 = vrsqrt.f32 %v95_v40  ;;  %vm104_vm4 = vmor %vm102_vm3, %vm103_vm2  ;;  %vm112_vm6 = vweird.f32 %v95_v40 }
 0x188   :  { %v98_v42 = vmul.f32 %v149_v39, %v97_v41 }
 0x18a   :  { %v99_v43 = vmul.f32 0.5, %v98_v42 }
 0x18c   :  { %v100_v44 = vsub.f32 1.5, %v99_v43 }
 0x18d   :  { %v151_v45 = vpop.eup %150 }
 0x18e   :  { %v101_v46 = vmul.f32 %v149_v39, %v100_v44  ;;  %v107_v47 = vmul.f32 %v151_v45, %v95_v40  ;;  %vm113_vm5 = vweird.f32 %v151_v45 }
 0x18f   :  { %vm114_vm7 = vmor %vm112_vm6, %vm113_vm5 }
 0x190   :  { %v105_v49 = vsel %vm104_vm4, %v149_v39, %v101_v46  ;;  %v108_v50 = vmul.f32 %v151_v45, %v107_v47 }
 0x191   :  { %v116_v52 = vmul.f32 %v105_v49, %v82_v26 }
 0x192   :  { %v109_v53 = vmul.f32 0.5, %v108_v50 }
 0x193   :  { %v122_v54 = vmul.f32 %v144_v48, %v116_v52 }
 0x194   :  { %v110_v55 = vsub.f32 1.5, %v109_v53 }
 0x195   :  { %v128_v56 = vadd.f32 %v145_v51, %v122_v54 }
 0x196   :  { %v111_v57 = vmul.f32 %v151_v45, %v110_v55 }
 0x197   :  { %130 = vst.msk [vmem:[%s241_s6] sm:$0xff] %vm33_vm0, %v128_v56 }
 0x198   :  { %v115_v58 = vsel %vm114_vm7, %v151_v45, %v111_v57 }
 0x199   :  { %v117_v59 = vmul.f32 %v115_v58, %v83_v31 }
 0x19b   :  { %v123_v60 = vmul.f32 %v144_v48, %v117_v59 }
 0x19d   :  { %v129_v61 = vadd.f32 %v145_v51, %v123_v60 }
 0x19f   :  { %131 = vst.msk [vmem:[%s241_s6 + $0x8] sm:$0xff] %vm33_vm0, %v129_v61 }

// kernel: transformer_forward.40
= control target key start
LH: loop header
LB: loop body
LE: loop exit
PB: predicated region body
PF: predicated region fallthrough
CT: control target
= control target key end

     0   :  { %s1030_s15 = smov 0   ;;  %s1032_s16 = smov 0   ;;  %s1146_s0 = inlined_call_operand.vmem [shape: f32[2,4,8,8], index: 0, kind: input, shape index: {}]   ;;  %s1147_s1 = inlined_call_operand.vmem [shape: f32[2,4,8,8], index: 1, kind: input, shape index: {}]   ;;  %s1148_s2 = inlined_call_operand.vmem [shape: f32[2,4,8,8], index: 2, kind: input, shape index: {}]   ;;  %s1149_s3 = inlined_call_operand.vmem [shape: f32[2,8,8], index: 3, kind: input, shape index: {}]   ;;  %s1150_s4 = inlined_call_operand.vmem [shape: f32[2,4,8,8], index: 4, kind: output, shape index: {}]  }
   0x1   :  { %s1034_s17 = smov 0  }
   0x2 LB: > { %s33_s18 = sadd.s32 1, %s996_s16  ;;  %p896_p0 = scmp.ge.s32.totalorder %s1000_s17, 1  ;;  %s1000_s17 = sphi %s1034_s17, %s14_s17   ;;  %s996_s16 = sphi %s1032_s16, %s1152_s16   ;;  %s992_s15 = sphi %s1030_s15, %s1151_s15  }
   0x3   : > { %p35_p1 = scmp.ge.s32.totalorder %s33_s18, 2  ;;  %p237_p2 = scmp.lt.s32.totalorder %s1000_s17, 3 }
   0x5   : > { %s1154_s18 = smov (%p35_p1, %s33_s18), 0  ;;  %p238_p3 = pnand %p896_p0, %p237_p2 }
   0x6   : > { %p295_p4 = scmp.lt.s32.totalorder (!%p238_p3), %s992_s15, 1 }
   0x7   : > { %241 = sbr.rel (%p238_p3) target bundleno = 694 (0x2b6), region = 36 }
   0xc   : > { %s1156_s15 = smov (!%p295_p4, %s992_s15), 1  ;;  %vm350_vm0 = vcmask 64512   ;;  %vm341_vm1 = vcmask 7168   ;;  %v1002_v8 = vmov -inf   ;;  %v1003_v26 = vmov 0  }
   0xd   : > { %s1051_s19 = sshll.u32 %s1156_s15, 5  ;;  %342 = vst.msk [vmem:[#allocation2] sm:$0xff] %vm341_vm1, %v1002_v8  ;;  %s903_s26 = sshll.u32 %s1156_s15, 3  ;;  %951 = vset.pattern.permute.xlu0 %v1003_v26  ;;  %953 = vset.pattern.permute.xlu2 %v1003_v26  ;;  %v1004_v27 = vmov 0.0  }
   0xe   : > { %s310_s22 = scalar_lea.vmem %s1147_s1, %s1051_s19  ;;  %s302_s25 = scalar_lea.vmem %s1146_s0, %s1051_s19  ;;  %343 = vst.msk [vmem:[#allocation2 + $0x8] sm:$0xff] %vm341_vm1, %v1002_v8  ;;  %952 = vset.pattern.permute.xlu1 %v1003_v26 }
   0xf   : > { %v359_v0 = vld [vmem:[%s310_s22] sm:$0xff]  ;;  %v361_v1 = vld [vmem:[%s310_s22 + $0x10] sm:$0xff]  ;;  %v360_v4 = vld [vmem:[%s310_s22 + $0x8] sm:$0xff]  ;;  %344 = vst.msk [vmem:[#allocation2 + $0x10] sm:$0xff] %vm341_vm1, %v1002_v8  ;;  %s328_s29 = scalar_lea.vmem %s1149_s3, %s903_s26  ;;  %s318_s6 = scalar_lea.vmem %s1148_s2, %s1051_s19 }
  0x10   : > { %v355_v2 = vld [vmem:[%s302_s25] sm:$0xff]  ;;  %906 = vmatpush.xpose.msk.msra.mxu0 %vm350_vm0, %v359_v0  ;;  %910 = vmatpush.xpose.msk.msra.mxu2 %vm350_vm0, %v361_v1  ;;  %v357_v3 = vld [vmem:[%s302_s25 + $0x10] sm:$0xff]  ;;  %v362_v5 = vld [vmem:[%s310_s22 + $0x18] sm:$0xff]  ;;  %345 = vst.msk [vmem:[#allocation2 + $0x18] sm:$0xff] %vm341_vm1, %v1002_v8  ;;  %s336_s9 = scalar_lea.vmem %s1150_s4, %s1051_s19 }
  0x11   : > { %908 = vmatpush.xpose.msk.msra.mxu1 %vm350_vm0, %v360_v4  ;;  %912 = vmatpush.xpose.msk.msra.mxu3 %vm350_vm0, %v362_v5  ;;  %v356_v6 = vld [vmem:[%s302_s25 + $0x8] sm:$0xff]  ;;  %v358_v7 = vld [vmem:[%s302_s25 + $0x18] sm:$0xff]  ;;  %v367_v9 = vld [vmem:[%s328_s29] sm:$0xff]  ;;  %348 = vst.msk [vmem:[#allocation3 + $0x10] sm:$0xff] %vm341_vm1, %v1004_v27 }
  0x12   : > { %vm477_vm2 = vcmp.gt.f32.partialorder %v367_v9, 0.5  ;;  %346 = vst.msk [vmem:[#allocation3] sm:$0xff] %vm341_vm1, %v1004_v27  ;;  %v365_v44 = vld [vmem:[%s318_s6 + $0x10] sm:$0xff]  ;;  %v366_v45 = vld [vmem:[%s318_s6 + $0x18] sm:$0xff]  ;;  %v363_v46 = vld [vmem:[%s318_s6] sm:$0xff] }
  0x13   : > { %907 = vmatmul.msk.f32.vlgmr.msra.gmra.mxu0 %vm350_vm0, %v355_v2  ;;  %911 = vmatmul.msk.f32.vlgmr.msra.gmra.mxu2 %vm350_vm0, %v357_v3  ;;  %347 = vst.msk [vmem:[#allocation3 + $0x8] sm:$0xff] %vm341_vm1, %v1004_v27  ;;  %v364_v47 = vld [vmem:[%s318_s6 + $0x8] sm:$0xff] }
  0x14   : > { %909 = vmatmul.msk.f32.vlgmr.msra.gmra.mxu1 %vm350_vm0, %v356_v6  ;;  %913 = vmatmul.msk.f32.vlgmr.msra.gmra.mxu3 %vm350_vm0, %v358_v7  ;;  %349 = vst.msk [vmem:[#allocation3 + $0x18] sm:$0xff] %vm341_vm1, %v1004_v27  ;;  %v1099_v28 = vld [vmem:[#allocation2] sm:$0xff] }
  0x15   : > { %351 = vst.msk [vmem:[#allocation4] sm:$0xff] %vm350_vm0, %v1004_v27  ;;  %v485_v34 = vld [vmem:[#allocation2 + $0x8] sm:$0xff]  ;;  %669 = vmatpush.msrb.mxu2 %v365_v44  ;;  %692 = vmatpush.msrb.mxu3 %v366_v45 }
  0x16   : > { %352 = vst.msk [vmem:[#allocation4 + $0x8] sm:$0xff] %vm350_vm0, %v1004_v27  ;;  %v486_v32 = vld [vmem:[#allocation2 + $0x10] sm:$0xff]  ;;  %623 = vmatpush.msrb.mxu0 %v363_v46  ;;  %646 = vmatpush.msrb.mxu1 %v364_v47 }
  0x17   : > { %353 = vst.msk [vmem:[#allocation4 + $0x10] sm:$0xff] %vm350_vm0, %v1004_v27  ;;  %v487_v40 = vld [vmem:[#allocation2 + $0x18] sm:$0xff] }
  0x18   : > { %354 = vst.msk [vmem:[#allocation4 + $0x18] sm:$0xff] %vm350_vm0, %v1004_v27 }
  0x1b   : > { %v551_v45 = vld [vmem:[#allocation3 + $0x18] sm:$0xff] }
  0x90   : > { %v392_v10 = vpop.f32.mrf.mxu0 }
  0x91   : > { %v473_v11 = vmul.f32 0.35355338, %v392_v10  ;;  %v418_v12 = vpop.f32.mrf.mxu1 }
  0x92   : > { %v474_v14 = vmul.f32 0.35355338, %v418_v12 }
  0x93   : > { %v1078_v13 = vsel %vm477_vm2, %v473_v11, -1e+09  ;;  %v550_v11 = vld [vmem:[#allocation3 + $0x10] sm:$0xff] }
  0x94   : > { %v488_v15 = vsel %vm350_vm0, %v1078_v13, -inf  ;;  %v1083_v18 = vsel %vm477_vm2, %v474_v14, -1e+09 }
  0x95   : > { %489 = vmax.xlane.f32.xlu1 %v488_v15  ;;  %v491_v23 = vsel %vm350_vm0, %v1083_v18, -inf }
  0x96   : > { %v444_v16 = vpop.f32.mrf.mxu2 }
  0x97   : > { %v475_v17 = vmul.f32 0.35355338, %v444_v16  ;;  %v470_v19 = vpop.f32.mrf.mxu3 }
  0x98   : > { %v476_v21 = vmul.f32 0.35355338, %v470_v19 }
  0x99   : > { %v482_v20 = vsel %vm477_vm2, %v475_v17, -1e+09  ;;  %v548_v17 = vld [vmem:[#allocation3] sm:$0xff] }
  0x9a   : > { %v494_v22 = vsel %vm350_vm0, %v482_v20, -inf  ;;  %v483_v24 = vsel %vm477_vm2, %v476_v21, -1e+09 }
  0x9b   : > { %495 = vmax.xlane.f32.xlu0 %v494_v22  ;;  %v497_v25 = vsel %vm350_vm0, %v483_v24, -inf  ;;  %v549_v22 = vld [vmem:[#allocation3 + $0x8] sm:$0xff] }
  0x9d   : > { %492 = vmax.xlane.f32.xlu1 %v491_v23  ;;  %v577_v23 = vld [vmem:[#allocation4] sm:$0xff] }
  0xa3   : > { %498 = vmax.xlane.f32.xlu0 %v497_v25 }
 0x108   : > { %v490_v29 = vpop.xlane.xlu1 %489 }
 0x109   : > { %v500_v30 = vmax.f32 %v1099_v28, %v490_v29 }
 0x10b   : > { %v504_v31 = vsub.f32 %v1099_v28, %v500_v30  ;;  %705 = vst.msk [vmem:[#allocation2] sm:$0xff] %vm341_vm1, %v500_v30  ;;  %518 = vperm.xlu0 %951, %v500_v30  }
 0x10d   : > { %v508_v3 = vmul.f32 1.442695, %v504_v31 }
 0x10e   : > { %v496_v33 = vpop.xlane.xlu0 %495 }
 0x10f   : > { %v502_v35 = vmax.f32 %v486_v32, %v496_v33 }
 0x110   : > { %v493_v36 = vpop.xlane.xlu1 %492 }
 0x111   : > { %v506_v37 = vsub.f32 %v486_v32, %v502_v35  ;;  %707 = vst.msk [vmem:[#allocation2 + $0x10] sm:$0xff] %vm341_vm1, %v502_v35  ;;  %v501_v38 = vmax.f32 %v485_v34, %v493_v36  ;;  %528 = vperm.xlu2 %953, %v502_v35   ;;  %v579_v32 = vld [vmem:[#allocation4 + $0x10] sm:$0xff] }
 0x113   : > { %v505_v39 = vsub.f32 %v485_v34, %v501_v38  ;;  %706 = vst.msk [vmem:[#allocation2 + $0x8] sm:$0xff] %vm341_vm1, %v501_v38  ;;  %523 = vperm.xlu1 %952, %v501_v38   ;;  %v512_v4 = vmul.f32 1.442695, %v506_v37 }
 0x115   : > { %v510_v5 = vmul.f32 1.442695, %v505_v39 }
 0x116   : > { %v499_v41 = vpop.xlane.xlu0 %498 }
 0x117   : > { %v503_v42 = vmax.f32 %v487_v40, %v499_v41 }
 0x119   : > { %v507_v43 = vsub.f32 %v487_v40, %v503_v42  ;;  %708 = vst.msk [vmem:[#allocation2 + $0x18] sm:$0xff] %vm341_vm1, %v503_v42  ;;  %533 = vperm.xlu2 %953, %v503_v42   ;;  %v578_v40 = vld [vmem:[#allocation4 + $0x8] sm:$0xff] }
 0x11b   : > { %v514_v10 = vmul.f32 1.442695, %v507_v43 }
 0x16b   : > { %v529_v48 = vpop.permute.xlu2 %528 }
 0x16c   : > { %v538_v49 = vsub.f32 %v482_v20, %v529_v48 }
 0x16e   : > { %v544_v50 = vmul.f32 1.442695, %v538_v49  ;;  %v580_v49 = vld [vmem:[#allocation4 + $0x18] sm:$0xff] }
 0x170   : > { %954 = vpow2.f32 %v544_v50 }
 0x173   : > { %v534_v51 = vpop.permute.xlu2 %533 }
 0x174   : > { %v539_v52 = vsub.f32 %v483_v24, %v534_v51 }
 0x176   : > { %v955_v53 = vpop.eup %954  ;;  %v546_v54 = vmul.f32 1.442695, %v539_v52 }
 0x177   : > { %916 = vmatmul.msk.f32.vlgmr.msrb.gmra.mxu2 %vm350_vm0, %v955_v53  ;;  %v562_v55 = vsel %vm350_vm0, %v955_v53, 0.0 }
 0x178   : > { %956 = vpow2.f32 %v546_v54  ;;  %563 = vadd.xlane.f32.xlu0 %v562_v55 }
 0x17d   : > { %v519_v56 = vpop.permute.xlu0 %518 }
 0x17e   : > { %v957_v57 = vpop.eup %956  ;;  %v536_v58 = vsub.f32 %v1078_v13, %v519_v56 }
 0x17f   : > { %917 = vmatmul.msk.f32.vlgmr.msrb.gmra.mxu3 %vm350_vm0, %v957_v57  ;;  %v565_v9 = vsel %vm350_vm0, %v957_v57, 0.0 }
 0x180   : > { %v540_v59 = vmul.f32 1.442695, %v536_v58 }
 0x182   : > { %958 = vpow2.f32 %v540_v59 }
 0x185   : > { %v524_v60 = vpop.permute.xlu1 %523 }
 0x186   : > { %v537_v61 = vsub.f32 %v1083_v18, %v524_v60 }
 0x188   : > { %v959_v62 = vpop.eup %958  ;;  %v542_v63 = vmul.f32 1.442695, %v537_v61 }
 0x189   : > { %914 = vmatmul.msk.f32.vlgmr.msrb.gmra.mxu0 %vm350_vm0, %v959_v62  ;;  %v556_v0 = vsel %vm350_vm0, %v959_v62, 0.0 }
 0x18a   : > { %960 = vpow2.f32 %v542_v63  ;;  %557 = vadd.xlane.f32.xlu2 %v556_v0 }
 0x18b   : > { %962 = vpow2.f32 %v508_v3 }
 0x18c   : > { %964 = vpow2.f32 %v512_v4 }
 0x18d   : > { %966 = vpow2.f32 %v510_v5 }
 0x18e   : > { %968 = vpow2.f32 %v514_v10 }
 0x190   : > { %v961_v1 = vpop.eup %960 }
 0x191   : > { %915 = vmatmul.msk.f32.vlgmr.msrb.gmra.mxu1 %vm350_vm0, %v961_v1  ;;  %v559_v2 = vsel %vm350_vm0, %v961_v1, 0.0  ;;  %v963_v6 = vpop.eup %962 }
 0x192   : > { %560 = vadd.xlane.f32.xlu1 %v559_v2  ;;  %v965_v7 = vpop.eup %964  ;;  %v552_v19 = vmul.f32 %v963_v6, %v548_v17 }
 0x193   : > { %v967_v8 = vpop.eup %966  ;;  %v554_v13 = vmul.f32 %v965_v7, %v550_v11 }
 0x194   : > { %v969_v12 = vpop.eup %968  ;;  %v553_v24 = vmul.f32 %v967_v8, %v549_v22 }
 0x195   : > { %v555_v46 = vmul.f32 %v969_v12, %v551_v45 }
 0x1a2   : > { %583 = vperm.xlu2 %953, %v963_v6  }
 0x1aa   : > { %593 = vperm.xlu2 %953, %v965_v7  }
 0x1ab   : > { %588 = vperm.xlu1 %952, %v967_v8  }
 0x1d3   : > { %566 = vadd.xlane.f32.xlu2 %v565_v9 }
 0x1eb   : > { %v564_v14 = vpop.xlane.xlu0 %563  ;;  %598 = vperm.xlu2 %953, %v969_v12  }
 0x1ec   : > { %v570_v15 = vadd.f32 %v564_v14, %v554_v13 }
 0x1ee   : > { %575 = vst.msk [vmem:[#allocation3 + $0x10] sm:$0xff] %vm341_vm1, %v570_v15 }
 0x1f5   : > { %v714_v16 = vld [vmem:[#allocation3 + $0x10] sm:$0xff] }
 0x1f6   : > { %970 = vrcp.f32 %v714_v16 }
 0x1fa   : > { %v671_v36 = vpop.f32.mrf.mxu2 }
 0x1fc   : > { %v971_v18 = vpop.eup %970 }
 0x1fd   : > { %v558_v20 = vpop.xlane.xlu2 %557  ;;  %736 = vperm.xlu1 %952, %v971_v18  }
 0x1fe   : > { %v568_v21 = vadd.f32 %v558_v20, %v552_v19 }
 0x200   : > { %573 = vst.msk [vmem:[#allocation3] sm:$0xff] %vm341_vm1, %v568_v21 }
 0x202   : > { %v694_v52 = vpop.f32.mrf.mxu3 }
 0x205   : > { %v584_v25 = vpop.permute.xlu2 %583  ;;  %v561_v26 = vpop.xlane.xlu1 %560 }
 0x206   : > { %v601_v27 = vmul.f32 %v584_v25, %v577_v23  ;;  %v569_v28 = vadd.f32 %v561_v26, %v553_v24  ;;  %v625_v29 = vpop.f32.mrf.mxu0 }
 0x207   : > { %v712_v30 = vld [vmem:[#allocation3] sm:$0xff] }
 0x208   : > { %574 = vst.msk [vmem:[#allocation3 + $0x8] sm:$0xff] %vm341_vm1, %v569_v28  ;;  %v697_v31 = vadd.f32 %v625_v29, %v601_v27  ;;  %972 = vrcp.f32 %v712_v30 }
 0x20a   : > { %701 = vst.msk [vmem:[#allocation4] sm:$0xff] %vm350_vm0, %v697_v31 }
 0x20d   : > { %v594_v33 = vpop.permute.xlu2 %593 }
 0x20e   : > { %v973_v34 = vpop.eup %972  ;;  %v603_v35 = vmul.f32 %v594_v33, %v579_v32  ;;  %v648_v43 = vpop.f32.mrf.mxu1 }
 0x20f   : > { %726 = vperm.xlu0 %951, %v973_v34   ;;  %v713_v37 = vld [vmem:[#allocation3 + $0x8] sm:$0xff] }
 0x210   : > { %v699_v38 = vadd.f32 %v671_v36, %v603_v35  ;;  %974 = vrcp.f32 %v713_v37 }
 0x211   : > { %v720_v62 = vld [vmem:[#allocation4] sm:$0xff] }
 0x212   : > { %703 = vst.msk [vmem:[#allocation4 + $0x10] sm:$0xff] %vm350_vm0, %v699_v38 }
 0x216   : > { %v975_v39 = vpop.eup %974 }
 0x217   : > { %731 = vperm.xlu2 %953, %v975_v39  }
 0x219   : > { %v722_v56 = vld [vmem:[#allocation4 + $0x10] sm:$0xff] }
 0x21d   : > { %v589_v41 = vpop.permute.xlu1 %588 }
 0x21e   : > { %v602_v42 = vmul.f32 %v589_v41, %v578_v40 }
 0x220   : > { %v698_v44 = vadd.f32 %v648_v43, %v602_v42 }
 0x222   : > { %702 = vst.msk [vmem:[#allocation4 + $0x8] sm:$0xff] %vm350_vm0, %v698_v44 }
 0x229   : > { %v721_v59 = vld [vmem:[#allocation4 + $0x8] sm:$0xff] }
 0x246   : > { %v567_v47 = vpop.xlane.xlu2 %566 }
 0x247   : > { %v571_v48 = vadd.f32 %v567_v47, %v555_v46 }
 0x249   : > { %576 = vst.msk [vmem:[#allocation3 + $0x18] sm:$0xff] %vm341_vm1, %v571_v48 }
 0x24e   : > { %v599_v50 = vpop.permute.xlu2 %598 }
 0x24f   : > { %v604_v51 = vmul.f32 %v599_v50, %v580_v49 }
 0x250   : > { %v715_v53 = vld [vmem:[#allocation3 + $0x18] sm:$0xff] }
 0x251   : > { %v700_v54 = vadd.f32 %v694_v52, %v604_v51  ;;  %976 = vrcp.f32 %v715_v53 }
 0x253   : > { %704 = vst.msk [vmem:[#allocation4 + $0x18] sm:$0xff] %vm350_vm0, %v700_v54 }
 0x257   : > { %v977_v55 = vpop.eup %976 }
 0x258   : > { %741 = vperm.xlu2 %953, %v977_v55  }
 0x25a   : > { %v723_v1 = vld [vmem:[#allocation4 + $0x18] sm:$0xff] }
 0x26f   : > { %v737_v57 = vpop.permute.xlu1 %736 }
 0x270   : > { %v746_v58 = vmul.f32 %v737_v57, %v722_v56 }
 0x271   : > { %v732_v60 = vpop.permute.xlu2 %731 }
 0x272   : > { %750 = vst.msk [vmem:[%s336_s9 + $0x10] sm:$0xff] %vm350_vm0, %v746_v58  ;;  %v745_v61 = vmul.f32 %v732_v60, %v721_v59 }
 0x274   : > { %749 = vst.msk [vmem:[%s336_s9 + $0x8] sm:$0xff] %vm350_vm0, %v745_v61 }
 0x281   : > { %v727_v63 = vpop.permute.xlu0 %726 }
 0x282   : > { %v744_v0 = vmul.f32 %v727_v63, %v720_v62 }
 0x284   : > { %748 = vst.msk [vmem:[%s336_s9] sm:$0xff] %vm350_vm0, %v744_v0 }
 0x2b2   : > { %v742_v2 = vpop.permute.xlu2 %741 }
 0x2b3   : > { %v747_v3 = vmul.f32 %v742_v2, %v723_v1 }
 0x2b5   : > { %751 = vst.msk [vmem:[%s336_s9 + $0x18] sm:$0xff] %vm350_vm0, %v747_v3 }
 0x2b6 PF: > { %s14_s17 = sadd.s32 1, %s1000_s17   ;;  %s1151_s15 = smov %s996_s16 }
 0x2b7   : > { %p11_p5 = scmp.ge.s32.totalorder %s14_s17, 4   ;;  %s1152_s16 = smov %s1154_s18 }
 0x2b9   :  { %13 = sbr.rel (!%p11_p5) target bundleno = 2 (0x2), region = 83 }

// kernel: transformer_forward.32
= control target key start
LH: loop header
LB: loop body
LE: loop exit
PB: predicated region body
PF: predicated region fallthrough
CT: control target
= control target key end

     0   :  { %vm18_vm0 = vcmask 523264   ;;  %v91_v2 = vmov 0.0   ;;  %vm29_vm1 = vcmask 261120   ;;  %s145_s1 = inlined_call_operand.vmem [shape: f32[32,64], index: 1, kind: input, shape index: {}]   ;;  %s146_s2 = inlined_call_operand.vmem [shape: f32[1,64], index: 2, kind: input, shape index: {}]   ;;  %s147_s0 = inlined_call_operand.vmem [shape: f32[16,32], index: 0, kind: input, shape index: {}]   ;;  %s148_s3 = inlined_call_operand.vmem [shape: f32[16,64], index: 3, kind: output, shape index: {}]  }
   0x1   :  { %v28_v0 = vld [vmem:[%s145_s1 + $0x18] sm:$0xff]  ;;  %v27_v1 = vld [vmem:[%s145_s1 + $0x10] sm:$0xff]  ;;  %19 = vst.msk [vmem:[#allocation2] sm:$0xff] %vm18_vm0, %v91_v2  ;;  %v26_v3 = vld [vmem:[%s145_s1 + $0x8] sm:$0xff] }
   0x2   :  { %48 = vmatpush.msra.mxu0 %v28_v0  ;;  %85 = vmatpush.msra.mxu1 %v28_v0  ;;  %20 = vst.msk [vmem:[#allocation2 + $0x8] sm:$0xff] %vm18_vm0, %v91_v2  ;;  %v25_v4 = vld [vmem:[%s145_s1] sm:$0xff]  ;;  %v24_v6 = vld [vmem:[%s147_s0 + $0x8] sm:$0xff] }
   0x3   :  { %v23_v5 = vld [vmem:[%s147_s0] sm:$0xff] }
   0x4   :  { %49 = vmatpush.msra.mxu0 %v27_v1  ;;  %86 = vmatpush.msra.mxu1 %v27_v1  ;;  %v90_v13 = vld [vmem:[%s146_s2] ss:$0 sm:$0xff] }
   0x6   :  { %50 = vmatpush.msra.mxu0 %v26_v3  ;;  %87 = vmatpush.msra.mxu1 %v26_v3 }
   0x8   :  { %51 = vmatpush.msra.mxu0 %v25_v4  ;;  %88 = vmatpush.msra.mxu1 %v25_v4  ;;  %v21_v7 = vld [vmem:[#allocation2] sm:$0xff] }
   0x9   :  { %83 = vmatmul.msk.f32.vlgmr.msra.gmra.mxu0 %vm29_vm1, %v23_v5  ;;  %84 = vmatmul.msk.f32.vlgmr.msra.gmra.mxu1 %vm29_vm1, %v24_v6  ;;  %v22_v8 = vld [vmem:[#allocation2 + $0x8] sm:$0xff] }
  0x86   :  { %v53_v9 = vpop.f32.mrf.mxu0  ;;  %v56_v10 = vpop.f32.mrf.mxu1 }
  0x87   :  { %v59_v11 = vadd.f32 %v53_v9, %v21_v7  ;;  %v60_v12 = vadd.f32 %v56_v10, %v22_v8 }
  0x89   :  { %62 = vst.msk [vmem:[#allocation2] sm:$0xff] %vm18_vm0, %v59_v11 }
  0x8a   :  { %63 = vst.msk [vmem:[#allocation2 + $0x8] sm:$0xff] %vm18_vm0, %v60_v12 }
  0x90   :  { %v67_v14 = vld [vmem:[#allocation2] sm:$0xff] }
  0x91   :  { %v73_v15 = vadd.f32 %v90_v13, %v67_v14  ;;  %v68_v16 = vld [vmem:[#allocation2 + $0x8] sm:$0xff] }
  0x92   :  { %v74_v17 = vadd.f32 %v90_v13, %v68_v16 }
  0x93   :  { %v75_v18 = vmax.f32 %v73_v15, 0.0 }
  0x94   :  { %v76_v19 = vmax.f32 %v74_v17, 0.0 }
  0x95   :  { %77 = vst.msk [vmem:[%s148_s3] sm:$0xff] %vm18_vm0, %v75_v18 }
  0x96   :  { %78 = vst.msk [vmem:[%s148_s3 + $0x8] sm:$0xff] %vm18_vm0, %v76_v19 }

// kernel: transformer_forward.33
= control target key start
LH: loop header
LB: loop body
LE: loop exit
PB: predicated region body
PF: predicated region fallthrough
CT: control target
= control target key end

     0   :  { %vm37_vm0 = vcmask 523264   ;;  %vm71_vm1 = vcmask 261120   ;;  %v161_v21 = vmov 32.0   ;;  %s254_s1 = inlined_call_operand.vmem [shape: f32[64,32], index: 1, kind: input, shape index: {}]   ;;  %s255_s2 = inlined_call_operand.vmem [shape: f32[1,32], index: 2, kind: input, shape index: {}]   ;;  %s256_s0 = inlined_call_operand.vmem [shape: f32[16,64], index: 0, kind: input, shape index: {}]   ;;  %s257_s3 = inlined_call_operand.vmem [shape: f32[16,32], index: 3, kind: input, shape index: {}]   ;;  %s258_s4 = inlined_call_operand.vmem [shape: f32[1,32], index: 4, kind: input, shape index: {}]   ;;  %s259_s5 = inlined_call_operand.vmem [shape: f32[1,32], index: 5, kind: input, shape index: {}]   ;;  %s260_s6 = inlined_call_operand.vmem [shape: f32[16,32], index: 6, kind: output, shape index: {}]  }
   0x1   :  { %v32_v0 = vld [vmem:[%s254_s1 + $0x38] sm:$0xff]  ;;  %v31_v1 = vld [vmem:[%s254_s1 + $0x30] sm:$0xff]  ;;  %v30_v2 = vld [vmem:[%s254_s1 + $0x28] sm:$0xff]  ;;  %155 = vrcp.f32 %v161_v21 }
   0x2   :  { %52 = vmatpush.msra.mxu0 %v32_v0  ;;  %143 = vmatpush.msra.mxu1 %v32_v0  ;;  %v29_v3 = vld [vmem:[%s254_s1 + $0x20] sm:$0xff]  ;;  %v28_v4 = vld [vmem:[%s254_s1 + $0x18] sm:$0xff]  ;;  %v27_v5 = vld [vmem:[%s254_s1 + $0x10] sm:$0xff] }
   0x3   :  { %v26_v6 = vld [vmem:[%s254_s1 + $0x8] sm:$0xff]  ;;  %v25_v7 = vld [vmem:[%s254_s1] sm:$0xff] }
   0x4   :  { %53 = vmatpush.msra.mxu0 %v31_v1  ;;  %144 = vmatpush.msra.mxu1 %v31_v1  ;;  %v23_v8 = vld [vmem:[%s256_s0] sm:$0xff]  ;;  %v24_v9 = vld [vmem:[%s256_s0 + $0x8] sm:$0xff] }
   0x5   :  { %v152_v10 = vld [vmem:[%s255_s2] ss:$0 sm:$0xff]  ;;  %v68_v17 = vld [vmem:[%s257_s3 + $0x8] sm:$0xff] }
   0x6   :  { %54 = vmatpush.msra.mxu0 %v30_v2  ;;  %145 = vmatpush.msra.mxu1 %v30_v2  ;;  %v67_v12 = vld [vmem:[%s257_s3] sm:$0xff] }
   0x7   :  { %v156_v22 = vpop.eup %155  ;;  %v153_v52 = vld [vmem:[%s258_s4] ss:$0 sm:$0xff] }
   0x8   :  { %55 = vmatpush.msra.mxu0 %v29_v3  ;;  %146 = vmatpush.msra.mxu1 %v29_v3  ;;  %v79_v23 = vmul.f32 32.0, %v156_v22  ;;  %vm83_vm2 = vweird.f32 %v156_v22  ;;  %v154_v55 = vld [vmem:[%s259_s5] ss:$0 sm:$0xff] }
   0xa   :  { %56 = vmatpush.msra.mxu0 %v28_v4  ;;  %147 = vmatpush.msra.mxu1 %v28_v4  ;;  %v80_v24 = vsub.f32 1.0, %v79_v23 }
   0xc   :  { %57 = vmatpush.msra.mxu0 %v27_v5  ;;  %148 = vmatpush.msra.mxu1 %v27_v5  ;;  %v81_v25 = vmul.f32 %v156_v22, %v80_v24 }
   0xe   :  { %58 = vmatpush.msra.mxu0 %v26_v6  ;;  %149 = vmatpush.msra.mxu1 %v26_v6  ;;  %v82_v26 = vadd.f32 %v156_v22, %v81_v25 }
  0x10   :  { %59 = vmatpush.msra.mxu0 %v25_v7  ;;  %150 = vmatpush.msra.mxu1 %v25_v7  ;;  %v84_v27 = vsel %vm83_vm2, %v156_v22, %v82_v26 }
  0x11   :  { %141 = vmatmul.msk.f32.vlgmr.msra.gmra.mxu0 %vm37_vm0, %v23_v8  ;;  %142 = vmatmul.msk.f32.vlgmr.msra.gmra.mxu1 %vm37_vm0, %v24_v9 }
  0x8e   :  { %v61_v11 = vpop.f32.mrf.mxu0  ;;  %v64_v13 = vpop.f32.mrf.mxu1 }
  0x8f   :  { %v62_v14 = vadd.f32 %v152_v10, %v61_v11  ;;  %v65_v16 = vadd.f32 %v152_v10, %v64_v13 }
  0x91   :  { %v69_v15 = vadd.f32 %v67_v12, %v62_v14  ;;  %v70_v19 = vadd.f32 %v68_v17, %v65_v16 }
  0x93   :  { %v72_v18 = vsel %vm71_vm1, %v69_v15, 0.0  ;;  %v75_v20 = vsel %vm71_vm1, %v70_v19, 0.0 }
  0x94   :  { %73 = vadd.xlane.f32.xlu0 %v72_v18 }
  0x9c   :  { %76 = vadd.xlane.f32.xlu0 %v75_v20 }
 0x107   :  { %v74_v28 = vpop.xlane.xlu0 %73 }
 0x108   :  { %v85_v29 = vmul.f32 %v84_v27, %v74_v28 }
 0x10a   :  { %v87_v30 = vsub.f32 %v69_v15, %v85_v29 }
 0x10c   :  { %v89_v31 = vmul.f32 %v87_v30, %v87_v30 }
 0x10e   :  { %v91_v32 = vsel %vm71_vm1, %v89_v31, 0.0 }
 0x10f   :  { %92 = vadd.xlane.f32.xlu1 %v91_v32  ;;  %v77_v33 = vpop.xlane.xlu0 %76 }
 0x110   :  { %v86_v34 = vmul.f32 %v84_v27, %v77_v33 }
 0x112   :  { %v88_v35 = vsub.f32 %v70_v19, %v86_v34 }
 0x114   :  { %v90_v36 = vmul.f32 %v88_v35, %v88_v35 }
 0x116   :  { %v94_v37 = vsel %vm71_vm1, %v90_v36, 0.0 }
 0x117   :  { %95 = vadd.xlane.f32.xlu1 %v94_v37 }
 0x182   :  { %v93_v38 = vpop.xlane.xlu1 %92 }
 0x183   :  { %v97_v39 = vmul.f32 %v93_v38, %v84_v27 }
 0x185   :  { %v99_v40 = vadd.f32 1e-12, %v97_v39 }
 0x187   :  { %157 = vrsqrt.f32 %v99_v40  ;;  %vm107_vm4 = vweird.f32 %v99_v40 }
 0x18a   :  { %v96_v41 = vpop.xlane.xlu1 %95 }
 0x18b   :  { %v98_v42 = vmul.f32 %v96_v41, %v84_v27 }
 0x18d   :  { %v158_v43 = vpop.eup %157  ;;  %v100_v44 = vadd.f32 1e-12, %v98_v42 }
 0x18e   :  { %v102_v45 = vmul.f32 %v158_v43, %v99_v40  ;;  %vm108_vm3 = vweird.f32 %v158_v43 }
 0x18f   :  { %159 = vrsqrt.f32 %v100_v44  ;;  %vm109_vm5 = vmor %vm107_vm4, %vm108_vm3  ;;  %vm117_vm7 = vweird.f32 %v100_v44 }
 0x190   :  { %v103_v46 = vmul.f32 %v158_v43, %v102_v45 }
 0x192   :  { %v104_v47 = vmul.f32 0.5, %v103_v46 }
 0x194   :  { %v105_v48 = vsub.f32 1.5, %v104_v47 }
 0x195   :  { %v160_v49 = vpop.eup %159 }
 0x196   :  { %v106_v50 = vmul.f32 %v158_v43, %v105_v48  ;;  %v112_v51 = vmul.f32 %v160_v49, %v100_v44  ;;  %vm118_vm6 = vweird.f32 %v160_v49 }
 0x197   :  { %vm119_vm8 = vmor %vm117_vm7, %vm118_vm6 }
 0x198   :  { %v110_v53 = vsel %vm109_vm5, %v158_v43, %v106_v50  ;;  %v113_v54 = vmul.f32 %v160_v49, %v112_v51 }
 0x199   :  { %v121_v56 = vmul.f32 %v110_v53, %v87_v30 }
 0x19a   :  { %v114_v57 = vmul.f32 0.5, %v113_v54 }
 0x19b   :  { %v127_v58 = vmul.f32 %v153_v52, %v121_v56 }
 0x19c   :  { %v115_v59 = vsub.f32 1.5, %v114_v57 }
 0x19d   :  { %v133_v60 = vadd.f32 %v154_v55, %v127_v58 }
 0x19e   :  { %v116_v61 = vmul.f32 %v160_v49, %v115_v59 }
 0x19f   :  { %135 = vst.msk [vmem:[%s260_s6] sm:$0xff] %vm71_vm1, %v133_v60 }
 0x1a0   :  { %v120_v62 = vsel %vm119_vm8, %v160_v49, %v116_v61 }
 0x1a1   :  { %v122_v63 = vmul.f32 %v120_v62, %v88_v35 }
 0x1a3   :  { %v128_v0 = vmul.f32 %v153_v52, %v122_v63 }
 0x1a5   :  { %v134_v1 = vadd.f32 %v154_v55, %v128_v0 }
 0x1a7   :  { %136 = vst.msk [vmem:[%s260_s6 + $0x8] sm:$0xff] %vm71_vm1, %v134_v1 }

// kernel: transformer_forward.43
= control target key start
LH: loop header
LB: loop body
LE: loop exit
PB: predicated region body
PF: predicated region fallthrough
CT: control target
= control target key end

     0   :  { %vm18_vm0 = vcmask 523264   ;;  %v89_v2 = vmov 0.0   ;;  %vm29_vm1 = vcmask 261120   ;;  %s143_s1 = inlined_call_operand.vmem [shape: f32[32,64], index: 1, kind: input, shape index: {}]   ;;  %s144_s2 = inlined_call_operand.vmem [shape: f32[1,64], index: 2, kind: input, shape index: {}]   ;;  %s145_s0 = inlined_call_operand.vmem [shape: f32[16,32], index: 0, kind: input, shape index: {}]   ;;  %s146_s3 = inlined_call_operand.vmem [shape: f32[16,64], index: 3, kind: output, shape index: {}]  }
   0x1   :  { %v28_v0 = vld [vmem:[%s143_s1 + $0x18] sm:$0xff]  ;;  %v27_v1 = vld [vmem:[%s143_s1 + $0x10] sm:$0xff]  ;;  %19 = vst.msk [vmem:[#allocation2] sm:$0xff] %vm18_vm0, %v89_v2  ;;  %v26_v3 = vld [vmem:[%s143_s1 + $0x8] sm:$0xff] }
   0x2   :  { %48 = vmatpush.msra.mxu0 %v28_v0  ;;  %83 = vmatpush.msra.mxu1 %v28_v0  ;;  %20 = vst.msk [vmem:[#allocation2 + $0x8] sm:$0xff] %vm18_vm0, %v89_v2  ;;  %v25_v4 = vld [vmem:[%s143_s1] sm:$0xff]  ;;  %v24_v6 = vld [vmem:[%s145_s0 + $0x8] sm:$0xff] }
   0x3   :  { %v23_v5 = vld [vmem:[%s145_s0] sm:$0xff] }
   0x4   :  { %49 = vmatpush.msra.mxu0 %v27_v1  ;;  %84 = vmatpush.msra.mxu1 %v27_v1  ;;  %v88_v13 = vld [vmem:[%s144_s2] ss:$0 sm:$0xff] }
   0x6   :  { %50 = vmatpush.msra.mxu0 %v26_v3  ;;  %85 = vmatpush.msra.mxu1 %v26_v3 }
   0x8   :  { %51 = vmatpush.msra.mxu0 %v25_v4  ;;  %86 = vmatpush.msra.mxu1 %v25_v4  ;;  %v21_v7 = vld [vmem:[#allocation2] sm:$0xff] }
   0x9   :  { %81 = vmatmul.msk.f32.vlgmr.msra.gmra.mxu0 %vm29_vm1, %v23_v5  ;;  %82 = vmatmul.msk.f32.vlgmr.msra.gmra.mxu1 %vm29_vm1, %v24_v6  ;;  %v22_v8 = vld [vmem:[#allocation2 + $0x8] sm:$0xff] }
  0x86   :  { %v53_v9 = vpop.f32.mrf.mxu0  ;;  %v56_v10 = vpop.f32.mrf.mxu1 }
  0x87   :  { %v59_v11 = vadd.f32 %v53_v9, %v21_v7  ;;  %v60_v12 = vadd.f32 %v56_v10, %v22_v8 }
  0x89   :  { %62 = vst.msk [vmem:[#allocation2] sm:$0xff] %vm18_vm0, %v59_v11 }
  0x8a   :  { %63 = vst.msk [vmem:[#allocation2 + $0x8] sm:$0xff] %vm18_vm0, %v60_v12 }
  0x90   :  { %v67_v14 = vld [vmem:[#allocation2] sm:$0xff] }
  0x91   :  { %v73_v15 = vadd.f32 %v88_v13, %v67_v14  ;;  %v68_v16 = vld [vmem:[#allocation2 + $0x8] sm:$0xff] }
  0x92   :  { %v74_v17 = vadd.f32 %v88_v13, %v68_v16 }
  0x93   :  { %75 = vst.msk [vmem:[%s146_s3] sm:$0xff] %vm18_vm0, %v73_v15 }
  0x94   :  { %76 = vst.msk [vmem:[%s146_s3 + $0x8] sm:$0xff] %vm18_vm0, %v74_v17 }

// kernel: transformer_forward.57
= control target key start
LH: loop header
LB: loop body
LE: loop exit
PB: predicated region body
PF: predicated region fallthrough
CT: control target
= control target key end

     0   :  { %vm19_vm0 = vcmask 261120   ;;  %v132_v2 = vmov 0.0   ;;  %s188_s0 = inlined_call_operand.vmem [shape: f32[16,32], index: 0, kind: input, shape index: {}]   ;;  %s189_s1 = inlined_call_operand.vmem [shape: f32[32,32], index: 1, kind: input, shape index: {}]   ;;  %s190_s2 = inlined_call_operand.vmem [shape: f32[1,32], index: 2, kind: input, shape index: {}]   ;;  %s191_s3 = inlined_call_operand.hbm [shape: f32[16,32], index: 3, kind: output, shape index: {}]  }
   0x1   :  { %v29_v0 = vld [vmem:[%s189_s1 + $0x18] sm:$0xff]  ;;  %v28_v1 = vld [vmem:[%s189_s1 + $0x10] sm:$0xff]  ;;  %20 = vst.msk [vmem:[#allocation2] sm:$0xff] %vm19_vm0, %v132_v2  ;;  %v27_v3 = vld [vmem:[%s189_s1 + $0x8] sm:$0xff] }
   0x2   :  { %49 = vmatpush.msra.mxu0 %v29_v0  ;;  %97 = vmatpush.msra.mxu1 %v29_v0  ;;  %21 = vst.msk [vmem:[#allocation2 + $0x8] sm:$0xff] %vm19_vm0, %v132_v2 }
   0x3   :  { %8 = vsyncpa [#allocation4], 0  ;;  %v26_v4 = vld [vmem:[%s189_s1] sm:$0xff]  ;;  %v25_v6 = vld [vmem:[%s188_s0 + $0x8] sm:$0xff]  ;;  %s83_s28 = sshll.u32 %s191_s3, 4  ;;  %s134_s29 = smov 128   ;;  %s84_s28 = int_to_ptr.hbm [resolvable:$true] %s83_s28 }
   0x4   :  { %50 = vmatpush.msra.mxu0 %v28_v1  ;;  %98 = vmatpush.msra.mxu1 %v28_v1  ;;  %v24_v5 = vld [vmem:[%s188_s0] sm:$0xff]  ;;  %s133_s0 = smov [#allocation3]   ;;  %s135_s30 = smov 8  }
   0x5   :  { %v105_v13 = vld [vmem:[%s190_s2] ss:$0 sm:$0xff]  ;;  %s81_s25 = sshll.u32 %s133_s0, 4  ;;  %s82_s25 = int_to_ptr.vmem [resolvable:$true] %s81_s25 }
   0x6   :  { %51 = vmatpush.msra.mxu0 %v27_v3  ;;  %99 = vmatpush.msra.mxu1 %v27_v3 }
   0x8   :  { %52 = vmatpush.msra.mxu0 %v26_v4  ;;  %100 = vmatpush.msra.mxu1 %v26_v4  ;;  %v22_v7 = vld [vmem:[#allocation2] sm:$0xff] }
   0x9   :  { %95 = vmatmul.msk.f32.vlgmr.msra.gmra.mxu0 %vm19_vm0, %v24_v5  ;;  %96 = vmatmul.msk.f32.vlgmr.msra.gmra.mxu1 %vm19_vm0, %v25_v6  ;;  %v23_v8 = vld [vmem:[#allocation2 + $0x8] sm:$0xff] }
  0x86   :  { %v54_v9 = vpop.f32.mrf.mxu0  ;;  %v57_v10 = vpop.f32.mrf.mxu1 }
  0x87   :  { %v60_v11 = vadd.f32 %v54_v9, %v22_v7  ;;  %v61_v12 = vadd.f32 %v57_v10, %v23_v8 }
  0x89   :  { %62 = vst.msk [vmem:[#allocation2] sm:$0xff] %vm19_vm0, %v60_v11 }
  0x8a   :  { %63 = vst.msk [vmem:[#allocation2 + $0x8] sm:$0xff] %vm19_vm0, %v61_v12 }
  0x90   :  { %v67_v14 = vld [vmem:[#allocation2] sm:$0xff] }
  0x91   :  { %v68_v15 = vld [vmem:[#allocation2 + $0x8] sm:$0xff]  ;;  %v73_v16 = vadd.f32 %v105_v13, %v67_v14 }
  0x92   :  { %v74_v17 = vadd.f32 %v105_v13, %v68_v15 }
  0x93   :  { %75 = vst.msk [vmem:[#allocation3] sm:$0xff] %vm19_vm0, %v73_v16 }
  0x94   :  { %76 = vst.msk [vmem:[#allocation3 + $0x8] sm:$0xff] %vm19_vm0, %v74_v17 }
  0x95   :  { %89 = dma.vmem_to_hbm [thread:$0]  %s82_s25, 256, %s84_s28, [#allocation4], %s134_s29, %s134_s29, %s135_s30  }
  0x96   :  { %130 = dma.done.wait [#allocation4], 256  }
  0x97   :  { %131 = vsyncadd [#allocation4], 4294967040 }
  0x98   :  { %94 = vsyncpa [#allocation4], 1 }

</bundles_post_ra>
